<compile_context>
chip_gen: v6e
topology: v6e:2x2x1
jax: 0.10.0
libtpu: 0.0.40
codegen_flags: <defaults>
</compile_context>

<pallas_src>
import functools

import jax
import jax.numpy as jnp
import numpy as np
from jax.experimental import pallas as pl
from jax.experimental.pallas import tpu as pltpu


def _round_up(x, m):
    return (x + m - 1) // m * m


def _local_attn_kernel(x_ref, at_ref, w3t_ref, o_ref, *,
                       kh, kw, d, ph, pw, base, wpp, width, tc):
    """One grid step (= one group of batch segments concatenated on lanes).

    x_ref  : (CP, nb*Lp)  zero-padded input; channels on sublanes, flattened
                          padded spatial maps (one Lp segment per batch) on lanes.
    at_ref : (CP, CP)     A^T = W2 @ W1^T, zero padded to 8-multiples.
    w3t_ref: (COP, CP)    W3^T, zero padded.
    o_ref  : (COP, width) output slab; width = (nb-1)*Lp + spanp (128-multiple).
    """
    hi = jax.lax.Precision.HIGHEST
    at = at_ref[...]            # (CP, CP) f32
    w3t = w3t_ref[...]          # (COP, CP) f32
    cp = at.shape[0]

    # Flat-lane shift of each window offset (same for every batch segment).
    offsets = [base + (ki * d - ph) * wpp + (kj * d - pw)
               for ki in range(kh) for kj in range(kw)]

    # Column tiles keep vreg liveness bounded; tc divides width (128-multiple),
    # and every load/store below is a lane-dense static slice of the ref.
    for c0 in range(0, width, tc):
        # Fused q.k projection: logit = x_q^T (W1 W2^T) x_off = (A^T x_q).x_off
        xq = x_ref[:, base + c0: base + c0 + tc].astype(jnp.float32)   # (CP, tc)
        qa = jnp.dot(at, xq, precision=hi,
                     preferred_element_type=jnp.float32)               # (CP, tc)

        # Pass 1: the kh*kw logit rows and their running max (no rescale later).
        logits = []
        m = None
        for s in offsets:
            xoff = x_ref[:, s + c0: s + c0 + tc].astype(jnp.float32)   # (CP, tc)
            lg = jnp.sum(qa * xoff, axis=0, keepdims=True)             # (1, tc)
            logits.append(lg)
            m = lg if m is None else jnp.maximum(m, lg)

        # Pass 2: exp, denominator, softmax-weighted accumulate in x-space.
        denom = jnp.zeros((1, tc), jnp.float32)
        acc = jnp.zeros((cp, tc), jnp.float32)
        for lg, s in zip(logits, offsets):
            xoff = x_ref[:, s + c0: s + c0 + tc].astype(jnp.float32)
            e = jnp.exp(lg - m)
            denom = denom + e
            acc = acc + e * xoff

        # Value projection once (W3^T commutes with the per-position weights),
        # then EUP reciprocal + one Newton step (denom >= 1, exact to ~1e-7).
        r = pl.reciprocal(denom, approx=True)
        r = r * (2.0 - denom * r)
        out = jnp.dot(w3t, acc, precision=hi,
                      preferred_element_type=jnp.float32)              # (COP, tc)
        o_ref[:, c0:c0 + tc] = (out * r).astype(o_ref.dtype)


def local_attention(x, w1, w2, w3, kh, kw, dilate=1, batch_block=1):
    """x: (N, Cin, H, W) NCHW; w*: (Cin, Cout). Returns (N, Cout, H, W)."""
    n, cin, h, w = x.shape
    cout = w1.shape[1]
    d = dilate
    ph, pw = (kh // 2) * d, (kw // 2) * d

    # Zero padding: pw columns each side (unfold semantics); ph rows plus one
    # guard row so every negatively shifted flat slice stays in bounds.
    p_col = pw
    p_row = ph + (1 if pw > 0 else 0)
    hpp, wpp = h + 2 * p_row, w + 2 * p_col
    l_raw = hpp * wpp
    span = h * wpp                  # query region: H rows x all Wpp columns
    base = p_row * wpp
    s_max = ph * wpp + pw

    spanp = _round_up(span, 128)    # lane-dense per-batch output width
    # Per-batch segment length: every shifted window of the padded query slab
    # stays inside the segment, and it is a multiple of 128 lanes.
    lp = _round_up(max(l_raw, base + s_max + spanp), 128)

    cp = _round_up(cin, 8)          # channels padded to the 8-sublane tile
    cop = _round_up(cout, 8)

    nb = batch_block                # batch segments folded onto lanes per step
    assert n % nb == 0
    ng = n // nb
    width = (nb - 1) * lp + spanp   # lanes computed/stored per grid step

    # Keep NCHW; pad channels + spatial, flatten the padded map (contiguous =>
    # free reshape), pad lanes of each segment to Lp.
    xp = jnp.pad(x, ((0, 0), (0, cp - cin), (p_row, p_row), (p_col, p_col)))
    xflat = jnp.pad(xp.reshape(n, cp, l_raw), ((0, 0), (0, 0), (0, lp - l_raw)))
    if nb == 1:
        xcat = xflat                                       # (ng, cp, lp)
    else:
        # Concatenate nb batch segments on the lane axis; each segment carries
        # its own zero padding so window shifts never cross segments.
        xcat = (xflat.reshape(ng, nb, cp, lp)
                .transpose(0, 2, 1, 3)
                .reshape(ng, cp, nb * lp))

    hi = jax.lax.Precision.HIGHEST
    at = jnp.zeros((cp, cp), jnp.float32).at[:cin, :cin].set(
        jnp.dot(w2, w1.T, precision=hi))                   # A^T = W2 @ W1^T
    w3t = jnp.zeros((cop, cp), jnp.float32).at[:cout, :cin].set(w3.T)

    tc = 256 if width % 256 == 0 else 128
    kernel = functools.partial(_local_attn_kernel, kh=kh, kw=kw, d=d, ph=ph,
                               pw=pw, base=base, wpp=wpp, width=width, tc=tc)

    out3 = pl.pallas_call(
        kernel,
        out_shape=jax.ShapeDtypeStruct((ng, cop, width), x.dtype),
        grid_spec=pltpu.PrefetchScalarGridSpec(
            num_scalar_prefetch=0,
            grid=(ng,),
            in_specs=[
                pl.BlockSpec((None, cp, nb * lp), lambda g: (g, 0, 0)),
                pl.BlockSpec((cp, cp), lambda g: (0, 0)),
                pl.BlockSpec((cop, cp), lambda g: (0, 0)),
            ],
            out_specs=pl.BlockSpec((None, cop, width), lambda g: (g, 0, 0)),
        ),
        compiler_params=pltpu.CompilerParams(
            dimension_semantics=("parallel",)),
    )(xcat, at, w3t)

    # Extract per-batch query slabs; drop padded channels / columns.  (At
    # production sizes let the consumer read the padded (cop, h, wpp) layout
    # instead of materialising this slice.)
    segs = [out3[:, :cout, j * lp: j * lp + span] for j in range(nb)]
    out = jnp.stack(segs, axis=1).reshape(n, cout, h, wpp)
    return out[:, :, :, p_col:p_col + w]


def ref_forward(x, w1, w2, w3, kh, kw, dilate=1):
    """Pure-JAX reference mirroring the PyTorch module (f32, full precision)."""
    n, cin, h, w = x.shape
    cout = w1.shape[1]
    ph, pw = (kh // 2) * dilate, (kw // 2) * dilate
    hi = jax.lax.Precision.HIGHEST
    x_nhwc = jnp.transpose(x, (0, 2, 3, 1)).astype(jnp.float32)
    q = jnp.dot(x_nhwc, w1, precision=hi)
    k = jnp.dot(x_nhwc, w2, precision=hi)
    v = jnp.dot(x_nhwc, w3, precision=hi)
    kp = jnp.pad(k, ((0, 0), (ph, ph), (pw, pw), (0, 0)))
    vp = jnp.pad(v, ((0, 0), (ph, ph), (pw, pw), (0, 0)))
    logits = []
    for ki in range(kh):
        for kj in range(kw):
            logits.append(jnp.sum(
                q * kp[:, ki * dilate:ki * dilate + h,
                       kj * dilate:kj * dilate + w, :], axis=-1))
    logits = jnp.stack(logits, axis=-1)            # (N, H, W, kh*kw)
    p = jax.nn.softmax(logits, axis=-1)
    out = jnp.zeros((n, h, w, cout), jnp.float32)
    idx = 0
    for ki in range(kh):
        for kj in range(kw):
            out = out + p[..., idx:idx + 1] * vp[
                :, ki * dilate:ki * dilate + h, kj * dilate:kj * dilate + w, :]
            idx += 1
    return jnp.transpose(out, (0, 3, 1, 2))


if __name__ == "__main__":
    # Small deterministic config: inp_channels=4, out_channels=8, kH=kW=3.
    N, Cin, H, W = 2, 4, 16, 16
    Cout, kH, kW, dil = 8, 3, 3, 1

    key = jax.random.PRNGKey(0)
    kx, k1, k2, k3 = jax.random.split(key, 4)
    x = jax.random.normal(kx, (N, Cin, H, W), jnp.float32)
    # PyTorch conv weight is (Cout, Cin, 1, 1); stored here as (Cin, Cout).
    w1 = 0.2 * jax.random.normal(k1, (Cin, Cout), jnp.float32)
    w2 = 0.2 * jax.random.normal(k2, (Cin, Cout), jnp.float32)
    w3 = 0.2 * jax.random.normal(k3, (Cin, Cout), jnp.float32)

    ref = ref_forward(x, w1, w2, w3, kH, kW, dil)

    # Config 1: one batch per grid step (2 parallel steps -> both v7x TCs).
    fwd1 = jax.jit(functools.partial(local_attention, kh=kH, kw=kW,
                                     dilate=dil, batch_block=1))
    out1 = jax.block_until_ready(fwd1(x, w1, w2, w3))
    assert out1.shape == (N, Cout, H, W)
    np.testing.assert_allclose(np.asarray(out1), np.asarray(ref),
                               rtol=1e-4, atol=1e-4)

    # Config 2: both batches folded onto the lane axis (widest vector ops).
    fwd2 = jax.jit(functools.partial(local_attention, kh=kH, kw=kW,
                                     dilate=dil, batch_block=N))
    out2 = jax.block_until_ready(fwd2(x, w1, w2, w3))
    np.testing.assert_allclose(np.asarray(out2), np.asarray(ref),
                               rtol=1e-4, atol=1e-4)

    print("KERNEL_OK")
</pallas_src>

<mosaic_0001>
module attributes {stable_mosaic.version = 11 : i64} {
  func.func @_local_attn_kernel(%arg0: i32, %arg1: memref<1x8x512xf32, #tpu.memory_space<vmem>>, %arg2: memref<8x8xf32, #tpu.memory_space<vmem>>, %arg3: memref<8x8xf32, #tpu.memory_space<vmem>>, %arg4: memref<1x8x384xf32, #tpu.memory_space<vmem>>) attributes {dimension_semantics = [#tpu.dimension_semantics<parallel>], iteration_bounds = array<i64: 2>, scalar_prefetch = 0 : i64, scratch_operands = 0 : i64, tpu.core_type = #tpu.core_type<tc>, window_params = [{transform_indices = @transform_0, window_bounds = array<i64: 1, 8, 512>}, {pipeline_mode = #tpu.pipeline_mode<synchronous>, transform_indices = @transform_1, window_bounds = array<i64: 8, 8>}, {pipeline_mode = #tpu.pipeline_mode<synchronous>, transform_indices = @transform_2, window_bounds = array<i64: 8, 8>}, {transform_indices = @transform_3, window_bounds = array<i64: 1, 8, 384>}]} {
    %c0 = arith.constant 0 : index
    %c0_0 = arith.constant 0 : index
    %0 = vector.load %arg2[%c0, %c0_0] : memref<8x8xf32, #tpu.memory_space<vmem>>, vector<8x8xf32>
    %c0_1 = arith.constant 0 : index
    %c0_2 = arith.constant 0 : index
    %1 = vector.load %arg3[%c0_1, %c0_2] : memref<8x8xf32, #tpu.memory_space<vmem>>, vector<8x8xf32>
    %c0_3 = arith.constant 0 : index
    %c0_4 = arith.constant 0 : index
    %c36 = arith.constant 36 : index
    %2 = vector.load %arg1[%c0_3, %c0_4, %c36] : memref<1x8x512xf32, #tpu.memory_space<vmem>>, vector<1x8x128xf32>
    %3 = vector.shape_cast %2 : vector<1x8x128xf32> to vector<8x128xf32>
    %cst = arith.constant dense<0.000000e+00> : vector<8x128xf32>
    %4 = tpu.matmul %0, %3, %cst {dimension_numbers = #tpu.dot_dimension_numbers<[1], [0], [0], [1], [0, 0, 1, 1], [], []>, precision = #tpu.contract_precision<fp32>} : vector<8x8xf32>, vector<8x128xf32>, vector<8x128xf32> -> vector<8x128xf32>
    %c0_5 = arith.constant 0 : index
    %c0_6 = arith.constant 0 : index
    %c17 = arith.constant 17 : index
    %5 = vector.load %arg1[%c0_5, %c0_6, %c17] : memref<1x8x512xf32, #tpu.memory_space<vmem>>, vector<1x8x128xf32>
    %6 = vector.shape_cast %5 : vector<1x8x128xf32> to vector<8x128xf32>
    %7 = arith.mulf %4, %6 : vector<8x128xf32>
    %cst_7 = arith.constant dense<0.000000e+00> : vector<128xf32>
    %8 = vector.multi_reduction <add>, %7, %cst_7 [0] : vector<8x128xf32> to vector<128xf32>
    %9 = vector.shape_cast %8 : vector<128xf32> to vector<1x128xf32>
    %c0_8 = arith.constant 0 : index
    %c0_9 = arith.constant 0 : index
    %c18 = arith.constant 18 : index
    %10 = vector.load %arg1[%c0_8, %c0_9, %c18] : memref<1x8x512xf32, #tpu.memory_space<vmem>>, vector<1x8x128xf32>
    %11 = vector.shape_cast %10 : vector<1x8x128xf32> to vector<8x128xf32>
    %12 = arith.mulf %4, %11 : vector<8x128xf32>
    %cst_10 = arith.constant dense<0.000000e+00> : vector<128xf32>
    %13 = vector.multi_reduction <add>, %12, %cst_10 [0] : vector<8x128xf32> to vector<128xf32>
    %14 = vector.shape_cast %13 : vector<128xf32> to vector<1x128xf32>
    %15 = arith.maximumf %9, %14 : vector<1x128xf32>
    %c0_11 = arith.constant 0 : index
    %c0_12 = arith.constant 0 : index
    %c19 = arith.constant 19 : index
    %16 = vector.load %arg1[%c0_11, %c0_12, %c19] : memref<1x8x512xf32, #tpu.memory_space<vmem>>, vector<1x8x128xf32>
    %17 = vector.shape_cast %16 : vector<1x8x128xf32> to vector<8x128xf32>
    %18 = arith.mulf %4, %17 : vector<8x128xf32>
    %cst_13 = arith.constant dense<0.000000e+00> : vector<128xf32>
    %19 = vector.multi_reduction <add>, %18, %cst_13 [0] : vector<8x128xf32> to vector<128xf32>
    %20 = vector.shape_cast %19 : vector<128xf32> to vector<1x128xf32>
    %21 = arith.maximumf %15, %20 : vector<1x128xf32>
    %c0_14 = arith.constant 0 : index
    %c0_15 = arith.constant 0 : index
    %c35 = arith.constant 35 : index
    %22 = vector.load %arg1[%c0_14, %c0_15, %c35] : memref<1x8x512xf32, #tpu.memory_space<vmem>>, vector<1x8x128xf32>
    %23 = vector.shape_cast %22 : vector<1x8x128xf32> to vector<8x128xf32>
    %24 = arith.mulf %4, %23 : vector<8x128xf32>
    %cst_16 = arith.constant dense<0.000000e+00> : vector<128xf32>
    %25 = vector.multi_reduction <add>, %24, %cst_16 [0] : vector<8x128xf32> to vector<128xf32>
    %26 = vector.shape_cast %25 : vector<128xf32> to vector<1x128xf32>
    %27 = arith.maximumf %21, %26 : vector<1x128xf32>
    %c0_17 = arith.constant 0 : index
    %c0_18 = arith.constant 0 : index
    %c36_19 = arith.constant 36 : index
    %28 = vector.load %arg1[%c0_17, %c0_18, %c36_19] : memref<1x8x512xf32, #tpu.memory_space<vmem>>, vector<1x8x128xf32>
    %29 = vector.shape_cast %28 : vector<1x8x128xf32> to vector<8x128xf32>
    %30 = arith.mulf %4, %29 : vector<8x128xf32>
    %cst_20 = arith.constant dense<0.000000e+00> : vector<128xf32>
    %31 = vector.multi_reduction <add>, %30, %cst_20 [0] : vector<8x128xf32> to vector<128xf32>
    %32 = vector.shape_cast %31 : vector<128xf32> to vector<1x128xf32>
    %33 = arith.maximumf %27, %32 : vector<1x128xf32>
    %c0_21 = arith.constant 0 : index
    %c0_22 = arith.constant 0 : index
    %c37 = arith.constant 37 : index
    %34 = vector.load %arg1[%c0_21, %c0_22, %c37] : memref<1x8x512xf32, #tpu.memory_space<vmem>>, vector<1x8x128xf32>
    %35 = vector.shape_cast %34 : vector<1x8x128xf32> to vector<8x128xf32>
    %36 = arith.mulf %4, %35 : vector<8x128xf32>
    %cst_23 = arith.constant dense<0.000000e+00> : vector<128xf32>
    %37 = vector.multi_reduction <add>, %36, %cst_23 [0] : vector<8x128xf32> to vector<128xf32>
    %38 = vector.shape_cast %37 : vector<128xf32> to vector<1x128xf32>
    %39 = arith.maximumf %33, %38 : vector<1x128xf32>
    %c0_24 = arith.constant 0 : index
    %c0_25 = arith.constant 0 : index
    %c53 = arith.constant 53 : index
    %40 = vector.load %arg1[%c0_24, %c0_25, %c53] : memref<1x8x512xf32, #tpu.memory_space<vmem>>, vector<1x8x128xf32>
    %41 = vector.shape_cast %40 : vector<1x8x128xf32> to vector<8x128xf32>
    %42 = arith.mulf %4, %41 : vector<8x128xf32>
    %cst_26 = arith.constant dense<0.000000e+00> : vector<128xf32>
    %43 = vector.multi_reduction <add>, %42, %cst_26 [0] : vector<8x128xf32> to vector<128xf32>
    %44 = vector.shape_cast %43 : vector<128xf32> to vector<1x128xf32>
    %45 = arith.maximumf %39, %44 : vector<1x128xf32>
    %c0_27 = arith.constant 0 : index
    %c0_28 = arith.constant 0 : index
    %c54 = arith.constant 54 : index
    %46 = vector.load %arg1[%c0_27, %c0_28, %c54] : memref<1x8x512xf32, #tpu.memory_space<vmem>>, vector<1x8x128xf32>
    %47 = vector.shape_cast %46 : vector<1x8x128xf32> to vector<8x128xf32>
    %48 = arith.mulf %4, %47 : vector<8x128xf32>
    %cst_29 = arith.constant dense<0.000000e+00> : vector<128xf32>
    %49 = vector.multi_reduction <add>, %48, %cst_29 [0] : vector<8x128xf32> to vector<128xf32>
    %50 = vector.shape_cast %49 : vector<128xf32> to vector<1x128xf32>
    %51 = arith.maximumf %45, %50 : vector<1x128xf32>
    %c0_30 = arith.constant 0 : index
    %c0_31 = arith.constant 0 : index
    %c55 = arith.constant 55 : index
    %52 = vector.load %arg1[%c0_30, %c0_31, %c55] : memref<1x8x512xf32, #tpu.memory_space<vmem>>, vector<1x8x128xf32>
    %53 = vector.shape_cast %52 : vector<1x8x128xf32> to vector<8x128xf32>
    %54 = arith.mulf %4, %53 : vector<8x128xf32>
    %cst_32 = arith.constant dense<0.000000e+00> : vector<128xf32>
    %55 = vector.multi_reduction <add>, %54, %cst_32 [0] : vector<8x128xf32> to vector<128xf32>
    %56 = vector.shape_cast %55 : vector<128xf32> to vector<1x128xf32>
    %57 = arith.maximumf %51, %56 : vector<1x128xf32>
    %cst_33 = arith.constant 0.000000e+00 : f32
    %58 = vector.broadcast %cst_33 : f32 to vector<1x128xf32>
    %cst_34 = arith.constant 0.000000e+00 : f32
    %59 = vector.broadcast %cst_34 : f32 to vector<8x128xf32>
    %c0_35 = arith.constant 0 : index
    %c0_36 = arith.constant 0 : index
    %c17_37 = arith.constant 17 : index
    %60 = vector.load %arg1[%c0_35, %c0_36, %c17_37] : memref<1x8x512xf32, #tpu.memory_space<vmem>>, vector<1x8x128xf32>
    %61 = vector.shape_cast %60 : vector<1x8x128xf32> to vector<8x128xf32>
    %62 = arith.subf %9, %57 : vector<1x128xf32>
    %63 = math.exp %62 : vector<1x128xf32>
    %64 = arith.addf %58, %63 : vector<1x128xf32>
    %65 = vector.broadcast %63 : vector<1x128xf32> to vector<8x128xf32>
    %66 = arith.mulf %65, %61 : vector<8x128xf32>
    %67 = arith.addf %59, %66 : vector<8x128xf32>
    %c0_38 = arith.constant 0 : index
    %c0_39 = arith.constant 0 : index
    %c18_40 = arith.constant 18 : index
    %68 = vector.load %arg1[%c0_38, %c0_39, %c18_40] : memref<1x8x512xf32, #tpu.memory_space<vmem>>, vector<1x8x128xf32>
    %69 = vector.shape_cast %68 : vector<1x8x128xf32> to vector<8x128xf32>
    %70 = arith.subf %14, %57 : vector<1x128xf32>
    %71 = math.exp %70 : vector<1x128xf32>
    %72 = arith.addf %64, %71 : vector<1x128xf32>
    %73 = vector.broadcast %71 : vector<1x128xf32> to vector<8x128xf32>
    %74 = arith.mulf %73, %69 : vector<8x128xf32>
    %75 = arith.addf %67, %74 : vector<8x128xf32>
    %c0_41 = arith.constant 0 : index
    %c0_42 = arith.constant 0 : index
    %c19_43 = arith.constant 19 : index
    %76 = vector.load %arg1[%c0_41, %c0_42, %c19_43] : memref<1x8x512xf32, #tpu.memory_space<vmem>>, vector<1x8x128xf32>
    %77 = vector.shape_cast %76 : vector<1x8x128xf32> to vector<8x128xf32>
    %78 = arith.subf %20, %57 : vector<1x128xf32>
    %79 = math.exp %78 : vector<1x128xf32>
    %80 = arith.addf %72, %79 : vector<1x128xf32>
    %81 = vector.broadcast %79 : vector<1x128xf32> to vector<8x128xf32>
    %82 = arith.mulf %81, %77 : vector<8x128xf32>
    %83 = arith.addf %75, %82 : vector<8x128xf32>
    %c0_44 = arith.constant 0 : index
    %c0_45 = arith.constant 0 : index
    %c35_46 = arith.constant 35 : index
    %84 = vector.load %arg1[%c0_44, %c0_45, %c35_46] : memref<1x8x512xf32, #tpu.memory_space<vmem>>, vector<1x8x128xf32>
    %85 = vector.shape_cast %84 : vector<1x8x128xf32> to vector<8x128xf32>
    %86 = arith.subf %26, %57 : vector<1x128xf32>
    %87 = math.exp %86 : vector<1x128xf32>
    %88 = arith.addf %80, %87 : vector<1x128xf32>
    %89 = vector.broadcast %87 : vector<1x128xf32> to vector<8x128xf32>
    %90 = arith.mulf %89, %85 : vector<8x128xf32>
    %91 = arith.addf %83, %90 : vector<8x128xf32>
    %c0_47 = arith.constant 0 : index
    %c0_48 = arith.constant 0 : index
    %c36_49 = arith.constant 36 : index
    %92 = vector.load %arg1[%c0_47, %c0_48, %c36_49] : memref<1x8x512xf32, #tpu.memory_space<vmem>>, vector<1x8x128xf32>
    %93 = vector.shape_cast %92 : vector<1x8x128xf32> to vector<8x128xf32>
    %94 = arith.subf %32, %57 : vector<1x128xf32>
    %95 = math.exp %94 : vector<1x128xf32>
    %96 = arith.addf %88, %95 : vector<1x128xf32>
    %97 = vector.broadcast %95 : vector<1x128xf32> to vector<8x128xf32>
    %98 = arith.mulf %97, %93 : vector<8x128xf32>
    %99 = arith.addf %91, %98 : vector<8x128xf32>
    %c0_50 = arith.constant 0 : index
    %c0_51 = arith.constant 0 : index
    %c37_52 = arith.constant 37 : index
    %100 = vector.load %arg1[%c0_50, %c0_51, %c37_52] : memref<1x8x512xf32, #tpu.memory_space<vmem>>, vector<1x8x128xf32>
    %101 = vector.shape_cast %100 : vector<1x8x128xf32> to vector<8x128xf32>
    %102 = arith.subf %38, %57 : vector<1x128xf32>
    %103 = math.exp %102 : vector<1x128xf32>
    %104 = arith.addf %96, %103 : vector<1x128xf32>
    %105 = vector.broadcast %103 : vector<1x128xf32> to vector<8x128xf32>
    %106 = arith.mulf %105, %101 : vector<8x128xf32>
    %107 = arith.addf %99, %106 : vector<8x128xf32>
    %c0_53 = arith.constant 0 : index
    %c0_54 = arith.constant 0 : index
    %c53_55 = arith.constant 53 : index
    %108 = vector.load %arg1[%c0_53, %c0_54, %c53_55] : memref<1x8x512xf32, #tpu.memory_space<vmem>>, vector<1x8x128xf32>
    %109 = vector.shape_cast %108 : vector<1x8x128xf32> to vector<8x128xf32>
    %110 = arith.subf %44, %57 : vector<1x128xf32>
    %111 = math.exp %110 : vector<1x128xf32>
    %112 = arith.addf %104, %111 : vector<1x128xf32>
    %113 = vector.broadcast %111 : vector<1x128xf32> to vector<8x128xf32>
    %114 = arith.mulf %113, %109 : vector<8x128xf32>
    %115 = arith.addf %107, %114 : vector<8x128xf32>
    %c0_56 = arith.constant 0 : index
    %c0_57 = arith.constant 0 : index
    %c54_58 = arith.constant 54 : index
    %116 = vector.load %arg1[%c0_56, %c0_57, %c54_58] : memref<1x8x512xf32, #tpu.memory_space<vmem>>, vector<1x8x128xf32>
    %117 = vector.shape_cast %116 : vector<1x8x128xf32> to vector<8x128xf32>
    %118 = arith.subf %50, %57 : vector<1x128xf32>
    %119 = math.exp %118 : vector<1x128xf32>
    %120 = arith.addf %112, %119 : vector<1x128xf32>
    %121 = vector.broadcast %119 : vector<1x128xf32> to vector<8x128xf32>
    %122 = arith.mulf %121, %117 : vector<8x128xf32>
    %123 = arith.addf %115, %122 : vector<8x128xf32>
    %c0_59 = arith.constant 0 : index
    %c0_60 = arith.constant 0 : index
    %c55_61 = arith.constant 55 : index
    %124 = vector.load %arg1[%c0_59, %c0_60, %c55_61] : memref<1x8x512xf32, #tpu.memory_space<vmem>>, vector<1x8x128xf32>
    %125 = vector.shape_cast %124 : vector<1x8x128xf32> to vector<8x128xf32>
    %126 = arith.subf %56, %57 : vector<1x128xf32>
    %127 = math.exp %126 : vector<1x128xf32>
    %128 = arith.addf %120, %127 : vector<1x128xf32>
    %129 = vector.broadcast %127 : vector<1x128xf32> to vector<8x128xf32>
    %130 = arith.mulf %129, %125 : vector<8x128xf32>
    %131 = arith.addf %123, %130 : vector<8x128xf32>
    %132 = tpu.reciprocal %128 {approx = true} : vector<1x128xf32> -> vector<1x128xf32>
    %133 = arith.mulf %128, %132 : vector<1x128xf32>
    %cst_62 = arith.constant 2.000000e+00 : f32
    %134 = vector.broadcast %cst_62 : f32 to vector<1x128xf32>
    %135 = arith.subf %134, %133 : vector<1x128xf32>
    %136 = arith.mulf %132, %135 : vector<1x128xf32>
    %cst_63 = arith.constant dense<0.000000e+00> : vector<8x128xf32>
    %137 = tpu.matmul %1, %131, %cst_63 {dimension_numbers = #tpu.dot_dimension_numbers<[1], [0], [0], [1], [0, 0, 1, 1], [], []>, precision = #tpu.contract_precision<fp32>} : vector<8x8xf32>, vector<8x128xf32>, vector<8x128xf32> -> vector<8x128xf32>
    %138 = vector.broadcast %136 : vector<1x128xf32> to vector<8x128xf32>
    %139 = arith.mulf %137, %138 : vector<8x128xf32>
    %c0_64 = arith.constant 0 : index
    %c0_65 = arith.constant 0 : index
    %c0_66 = arith.constant 0 : index
    %140 = vector.load %arg4[%c0_64, %c0_65, %c0_66] : memref<1x8x384xf32, #tpu.memory_space<vmem>>, vector<1x8x128xf32>
    %141 = vector.shape_cast %140 : vector<1x8x128xf32> to vector<8x128xf32>
    %142 = vector.shape_cast %139 : vector<8x128xf32> to vector<1x8x128xf32>
    tpu.vector_store %arg4[%c0_64, %c0_65, %c0_66], %142 {strides = array<i32>} : memref<1x8x384xf32, #tpu.memory_space<vmem>>, vector<1x8x128xf32>,
    %c0_67 = arith.constant 0 : index
    %c0_68 = arith.constant 0 : index
    %c164 = arith.constant 164 : index
    %143 = vector.load %arg1[%c0_67, %c0_68, %c164] : memref<1x8x512xf32, #tpu.memory_space<vmem>>, vector<1x8x128xf32>
    %144 = vector.shape_cast %143 : vector<1x8x128xf32> to vector<8x128xf32>
    %cst_69 = arith.constant dense<0.000000e+00> : vector<8x128xf32>
    %145 = tpu.matmul %0, %144, %cst_69 {dimension_numbers = #tpu.dot_dimension_numbers<[1], [0], [0], [1], [0, 0, 1, 1], [], []>, precision = #tpu.contract_precision<fp32>} : vector<8x8xf32>, vector<8x128xf32>, vector<8x128xf32> -> vector<8x128xf32>
    %c0_70 = arith.constant 0 : index
    %c0_71 = arith.constant 0 : index
    %c145 = arith.constant 145 : index
    %146 = vector.load %arg1[%c0_70, %c0_71, %c145] : memref<1x8x512xf32, #tpu.memory_space<vmem>>, vector<1x8x128xf32>
    %147 = vector.shape_cast %146 : vector<1x8x128xf32> to vector<8x128xf32>
    %148 = arith.mulf %145, %147 : vector<8x128xf32>
    %cst_72 = arith.constant dense<0.000000e+00> : vector<128xf32>
    %149 = vector.multi_reduction <add>, %148, %cst_72 [0] : vector<8x128xf32> to vector<128xf32>
    %150 = vector.shape_cast %149 : vector<128xf32> to vector<1x128xf32>
    %c0_73 = arith.constant 0 : index
    %c0_74 = arith.constant 0 : index
    %c146 = arith.constant 146 : index
    %151 = vector.load %arg1[%c0_73, %c0_74, %c146] : memref<1x8x512xf32, #tpu.memory_space<vmem>>, vector<1x8x128xf32>
    %152 = vector.shape_cast %151 : vector<1x8x128xf32> to vector<8x128xf32>
    %153 = arith.mulf %145, %152 : vector<8x128xf32>
    %cst_75 = arith.constant dense<0.000000e+00> : vector<128xf32>
    %154 = vector.multi_reduction <add>, %153, %cst_75 [0] : vector<8x128xf32> to vector<128xf32>
    %155 = vector.shape_cast %154 : vector<128xf32> to vector<1x128xf32>
    %156 = arith.maximumf %150, %155 : vector<1x128xf32>
    %c0_76 = arith.constant 0 : index
    %c0_77 = arith.constant 0 : index
    %c147 = arith.constant 147 : index
    %157 = vector.load %arg1[%c0_76, %c0_77, %c147] : memref<1x8x512xf32, #tpu.memory_space<vmem>>, vector<1x8x128xf32>
    %158 = vector.shape_cast %157 : vector<1x8x128xf32> to vector<8x128xf32>
    %159 = arith.mulf %145, %158 : vector<8x128xf32>
    %cst_78 = arith.constant dense<0.000000e+00> : vector<128xf32>
    %160 = vector.multi_reduction <add>, %159, %cst_78 [0] : vector<8x128xf32> to vector<128xf32>
    %161 = vector.shape_cast %160 : vector<128xf32> to vector<1x128xf32>
    %162 = arith.maximumf %156, %161 : vector<1x128xf32>
    %c0_79 = arith.constant 0 : index
    %c0_80 = arith.constant 0 : index
    %c163 = arith.constant 163 : index
    %163 = vector.load %arg1[%c0_79, %c0_80, %c163] : memref<1x8x512xf32, #tpu.memory_space<vmem>>, vector<1x8x128xf32>
    %164 = vector.shape_cast %163 : vector<1x8x128xf32> to vector<8x128xf32>
    %165 = arith.mulf %145, %164 : vector<8x128xf32>
    %cst_81 = arith.constant dense<0.000000e+00> : vector<128xf32>
    %166 = vector.multi_reduction <add>, %165, %cst_81 [0] : vector<8x128xf32> to vector<128xf32>
    %167 = vector.shape_cast %166 : vector<128xf32> to vector<1x128xf32>
    %168 = arith.maximumf %162, %167 : vector<1x128xf32>
    %c0_82 = arith.constant 0 : index
    %c0_83 = arith.constant 0 : index
    %c164_84 = arith.constant 164 : index
    %169 = vector.load %arg1[%c0_82, %c0_83, %c164_84] : memref<1x8x512xf32, #tpu.memory_space<vmem>>, vector<1x8x128xf32>
    %170 = vector.shape_cast %169 : vector<1x8x128xf32> to vector<8x128xf32>
    %171 = arith.mulf %145, %170 : vector<8x128xf32>
    %cst_85 = arith.constant dense<0.000000e+00> : vector<128xf32>
    %172 = vector.multi_reduction <add>, %171, %cst_85 [0] : vector<8x128xf32> to vector<128xf32>
    %173 = vector.shape_cast %172 : vector<128xf32> to vector<1x128xf32>
    %174 = arith.maximumf %168, %173 : vector<1x128xf32>
    %c0_86 = arith.constant 0 : index
    %c0_87 = arith.constant 0 : index
    %c165 = arith.constant 165 : index
    %175 = vector.load %arg1[%c0_86, %c0_87, %c165] : memref<1x8x512xf32, #tpu.memory_space<vmem>>, vector<1x8x128xf32>
    %176 = vector.shape_cast %175 : vector<1x8x128xf32> to vector<8x128xf32>
    %177 = arith.mulf %145, %176 : vector<8x128xf32>
    %cst_88 = arith.constant dense<0.000000e+00> : vector<128xf32>
    %178 = vector.multi_reduction <add>, %177, %cst_88 [0] : vector<8x128xf32> to vector<128xf32>
    %179 = vector.shape_cast %178 : vector<128xf32> to vector<1x128xf32>
    %180 = arith.maximumf %174, %179 : vector<1x128xf32>
    %c0_89 = arith.constant 0 : index
    %c0_90 = arith.constant 0 : index
    %c181 = arith.constant 181 : index
    %181 = vector.load %arg1[%c0_89, %c0_90, %c181] : memref<1x8x512xf32, #tpu.memory_space<vmem>>, vector<1x8x128xf32>
    %182 = vector.shape_cast %181 : vector<1x8x128xf32> to vector<8x128xf32>
    %183 = arith.mulf %145, %182 : vector<8x128xf32>
    %cst_91 = arith.constant dense<0.000000e+00> : vector<128xf32>
    %184 = vector.multi_reduction <add>, %183, %cst_91 [0] : vector<8x128xf32> to vector<128xf32>
    %185 = vector.shape_cast %184 : vector<128xf32> to vector<1x128xf32>
    %186 = arith.maximumf %180, %185 : vector<1x128xf32>
    %c0_92 = arith.constant 0 : index
    %c0_93 = arith.constant 0 : index
    %c182 = arith.constant 182 : index
    %187 = vector.load %arg1[%c0_92, %c0_93, %c182] : memref<1x8x512xf32, #tpu.memory_space<vmem>>, vector<1x8x128xf32>
    %188 = vector.shape_cast %187 : vector<1x8x128xf32> to vector<8x128xf32>
    %189 = arith.mulf %145, %188 : vector<8x128xf32>
    %cst_94 = arith.constant dense<0.000000e+00> : vector<128xf32>
    %190 = vector.multi_reduction <add>, %189, %cst_94 [0] : vector<8x128xf32> to vector<128xf32>
    %191 = vector.shape_cast %190 : vector<128xf32> to vector<1x128xf32>
    %192 = arith.maximumf %186, %191 : vector<1x128xf32>
    %c0_95 = arith.constant 0 : index
    %c0_96 = arith.constant 0 : index
    %c183 = arith.constant 183 : index
    %193 = vector.load %arg1[%c0_95, %c0_96, %c183] : memref<1x8x512xf32, #tpu.memory_space<vmem>>, vector<1x8x128xf32>
    %194 = vector.shape_cast %193 : vector<1x8x128xf32> to vector<8x128xf32>
    %195 = arith.mulf %145, %194 : vector<8x128xf32>
    %cst_97 = arith.constant dense<0.000000e+00> : vector<128xf32>
    %196 = vector.multi_reduction <add>, %195, %cst_97 [0] : vector<8x128xf32> to vector<128xf32>
    %197 = vector.shape_cast %196 : vector<128xf32> to vector<1x128xf32>
    %198 = arith.maximumf %192, %197 : vector<1x128xf32>
    %cst_98 = arith.constant 0.000000e+00 : f32
    %199 = vector.broadcast %cst_98 : f32 to vector<1x128xf32>
    %cst_99 = arith.constant 0.000000e+00 : f32
    %200 = vector.broadcast %cst_99 : f32 to vector<8x128xf32>
    %c0_100 = arith.constant 0 : index
    %c0_101 = arith.constant 0 : index
    %c145_102 = arith.constant 145 : index
    %201 = vector.load %arg1[%c0_100, %c0_101, %c145_102] : memref<1x8x512xf32, #tpu.memory_space<vmem>>, vector<1x8x128xf32>
    %202 = vector.shape_cast %201 : vector<1x8x128xf32> to vector<8x128xf32>
    %203 = arith.subf %150, %198 : vector<1x128xf32>
    %204 = math.exp %203 : vector<1x128xf32>
    %205 = arith.addf %199, %204 : vector<1x128xf32>
    %206 = vector.broadcast %204 : vector<1x128xf32> to vector<8x128xf32>
    %207 = arith.mulf %206, %202 : vector<8x128xf32>
    %208 = arith.addf %200, %207 : vector<8x128xf32>
    %c0_103 = arith.constant 0 : index
    %c0_104 = arith.constant 0 : index
    %c146_105 = arith.constant 146 : index
    %209 = vector.load %arg1[%c0_103, %c0_104, %c146_105] : memref<1x8x512xf32, #tpu.memory_space<vmem>>, vector<1x8x128xf32>
    %210 = vector.shape_cast %209 : vector<1x8x128xf32> to vector<8x128xf32>
    %211 = arith.subf %155, %198 : vector<1x128xf32>
    %212 = math.exp %211 : vector<1x128xf32>
    %213 = arith.addf %205, %212 : vector<1x128xf32>
    %214 = vector.broadcast %212 : vector<1x128xf32> to vector<8x128xf32>
    %215 = arith.mulf %214, %210 : vector<8x128xf32>
    %216 = arith.addf %208, %215 : vector<8x128xf32>
    %c0_106 = arith.constant 0 : index
    %c0_107 = arith.constant 0 : index
    %c147_108 = arith.constant 147 : index
    %217 = vector.load %arg1[%c0_106, %c0_107, %c147_108] : memref<1x8x512xf32, #tpu.memory_space<vmem>>, vector<1x8x128xf32>
    %218 = vector.shape_cast %217 : vector<1x8x128xf32> to vector<8x128xf32>
    %219 = arith.subf %161, %198 : vector<1x128xf32>
    %220 = math.exp %219 : vector<1x128xf32>
    %221 = arith.addf %213, %220 : vector<1x128xf32>
    %222 = vector.broadcast %220 : vector<1x128xf32> to vector<8x128xf32>
    %223 = arith.mulf %222, %218 : vector<8x128xf32>
    %224 = arith.addf %216, %223 : vector<8x128xf32>
    %c0_109 = arith.constant 0 : index
    %c0_110 = arith.constant 0 : index
    %c163_111 = arith.constant 163 : index
    %225 = vector.load %arg1[%c0_109, %c0_110, %c163_111] : memref<1x8x512xf32, #tpu.memory_space<vmem>>, vector<1x8x128xf32>
    %226 = vector.shape_cast %225 : vector<1x8x128xf32> to vector<8x128xf32>
    %227 = arith.subf %167, %198 : vector<1x128xf32>
    %228 = math.exp %227 : vector<1x128xf32>
    %229 = arith.addf %221, %228 : vector<1x128xf32>
    %230 = vector.broadcast %228 : vector<1x128xf32> to vector<8x128xf32>
    %231 = arith.mulf %230, %226 : vector<8x128xf32>
    %232 = arith.addf %224, %231 : vector<8x128xf32>
    %c0_112 = arith.constant 0 : index
    %c0_113 = arith.constant 0 : index
    %c164_114 = arith.constant 164 : index
    %233 = vector.load %arg1[%c0_112, %c0_113, %c164_114] : memref<1x8x512xf32, #tpu.memory_space<vmem>>, vector<1x8x128xf32>
    %234 = vector.shape_cast %233 : vector<1x8x128xf32> to vector<8x128xf32>
    %235 = arith.subf %173, %198 : vector<1x128xf32>
    %236 = math.exp %235 : vector<1x128xf32>
    %237 = arith.addf %229, %236 : vector<1x128xf32>
    %238 = vector.broadcast %236 : vector<1x128xf32> to vector<8x128xf32>
    %239 = arith.mulf %238, %234 : vector<8x128xf32>
    %240 = arith.addf %232, %239 : vector<8x128xf32>
    %c0_115 = arith.constant 0 : index
    %c0_116 = arith.constant 0 : index
    %c165_117 = arith.constant 165 : index
    %241 = vector.load %arg1[%c0_115, %c0_116, %c165_117] : memref<1x8x512xf32, #tpu.memory_space<vmem>>, vector<1x8x128xf32>
    %242 = vector.shape_cast %241 : vector<1x8x128xf32> to vector<8x128xf32>
    %243 = arith.subf %179, %198 : vector<1x128xf32>
    %244 = math.exp %243 : vector<1x128xf32>
    %245 = arith.addf %237, %244 : vector<1x128xf32>
    %246 = vector.broadcast %244 : vector<1x128xf32> to vector<8x128xf32>
    %247 = arith.mulf %246, %242 : vector<8x128xf32>
    %248 = arith.addf %240, %247 : vector<8x128xf32>
    %c0_118 = arith.constant 0 : index
    %c0_119 = arith.constant 0 : index
    %c181_120 = arith.constant 181 : index
    %249 = vector.load %arg1[%c0_118, %c0_119, %c181_120] : memref<1x8x512xf32, #tpu.memory_space<vmem>>, vector<1x8x128xf32>
    %250 = vector.shape_cast %249 : vector<1x8x128xf32> to vector<8x128xf32>
    %251 = arith.subf %185, %198 : vector<1x128xf32>
    %252 = math.exp %251 : vector<1x128xf32>
    %253 = arith.addf %245, %252 : vector<1x128xf32>
    %254 = vector.broadcast %252 : vector<1x128xf32> to vector<8x128xf32>
    %255 = arith.mulf %254, %250 : vector<8x128xf32>
    %256 = arith.addf %248, %255 : vector<8x128xf32>
    %c0_121 = arith.constant 0 : index
    %c0_122 = arith.constant 0 : index
    %c182_123 = arith.constant 182 : index
    %257 = vector.load %arg1[%c0_121, %c0_122, %c182_123] : memref<1x8x512xf32, #tpu.memory_space<vmem>>, vector<1x8x128xf32>
    %258 = vector.shape_cast %257 : vector<1x8x128xf32> to vector<8x128xf32>
    %259 = arith.subf %191, %198 : vector<1x128xf32>
    %260 = math.exp %259 : vector<1x128xf32>
    %261 = arith.addf %253, %260 : vector<1x128xf32>
    %262 = vector.broadcast %260 : vector<1x128xf32> to vector<8x128xf32>
    %263 = arith.mulf %262, %258 : vector<8x128xf32>
    %264 = arith.addf %256, %263 : vector<8x128xf32>
    %c0_124 = arith.constant 0 : index
    %c0_125 = arith.constant 0 : index
    %c183_126 = arith.constant 183 : index
    %265 = vector.load %arg1[%c0_124, %c0_125, %c183_126] : memref<1x8x512xf32, #tpu.memory_space<vmem>>, vector<1x8x128xf32>
    %266 = vector.shape_cast %265 : vector<1x8x128xf32> to vector<8x128xf32>
    %267 = arith.subf %197, %198 : vector<1x128xf32>
    %268 = math.exp %267 : vector<1x128xf32>
    %269 = arith.addf %261, %268 : vector<1x128xf32>
    %270 = vector.broadcast %268 : vector<1x128xf32> to vector<8x128xf32>
    %271 = arith.mulf %270, %266 : vector<8x128xf32>
    %272 = arith.addf %264, %271 : vector<8x128xf32>
    %273 = tpu.reciprocal %269 {approx = true} : vector<1x128xf32> -> vector<1x128xf32>
    %274 = arith.mulf %269, %273 : vector<1x128xf32>
    %cst_127 = arith.constant 2.000000e+00 : f32
    %275 = vector.broadcast %cst_127 : f32 to vector<1x128xf32>
    %276 = arith.subf %275, %274 : vector<1x128xf32>
    %277 = arith.mulf %273, %276 : vector<1x128xf32>
    %cst_128 = arith.constant dense<0.000000e+00> : vector<8x128xf32>
    %278 = tpu.matmul %1, %272, %cst_128 {dimension_numbers = #tpu.dot_dimension_numbers<[1], [0], [0], [1], [0, 0, 1, 1], [], []>, precision = #tpu.contract_precision<fp32>} : vector<8x8xf32>, vector<8x128xf32>, vector<8x128xf32> -> vector<8x128xf32>
    %279 = vector.broadcast %277 : vector<1x128xf32> to vector<8x128xf32>
    %280 = arith.mulf %278, %279 : vector<8x128xf32>
    %c0_129 = arith.constant 0 : index
    %c0_130 = arith.constant 0 : index
    %c128 = arith.constant 128 : index
    %281 = vector.load %arg4[%c0_129, %c0_130, %c128] : memref<1x8x384xf32, #tpu.memory_space<vmem>>, vector<1x8x128xf32>
    %282 = vector.shape_cast %281 : vector<1x8x128xf32> to vector<8x128xf32>
    %283 = vector.shape_cast %280 : vector<8x128xf32> to vector<1x8x128xf32>
    tpu.vector_store %arg4[%c0_129, %c0_130, %c128], %283 {strides = array<i32>} : memref<1x8x384xf32, #tpu.memory_space<vmem>>, vector<1x8x128xf32>,
    %c0_131 = arith.constant 0 : index
    %c0_132 = arith.constant 0 : index
    %c292 = arith.constant 292 : index
    %284 = vector.load %arg1[%c0_131, %c0_132, %c292] : memref<1x8x512xf32, #tpu.memory_space<vmem>>, vector<1x8x128xf32>
    %285 = vector.shape_cast %284 : vector<1x8x128xf32> to vector<8x128xf32>
    %cst_133 = arith.constant dense<0.000000e+00> : vector<8x128xf32>
    %286 = tpu.matmul %0, %285, %cst_133 {dimension_numbers = #tpu.dot_dimension_numbers<[1], [0], [0], [1], [0, 0, 1, 1], [], []>, precision = #tpu.contract_precision<fp32>} : vector<8x8xf32>, vector<8x128xf32>, vector<8x128xf32> -> vector<8x128xf32>
    %c0_134 = arith.constant 0 : index
    %c0_135 = arith.constant 0 : index
    %c273 = arith.constant 273 : index
    %287 = vector.load %arg1[%c0_134, %c0_135, %c273] : memref<1x8x512xf32, #tpu.memory_space<vmem>>, vector<1x8x128xf32>
    %288 = vector.shape_cast %287 : vector<1x8x128xf32> to vector<8x128xf32>
    %289 = arith.mulf %286, %288 : vector<8x128xf32>
    %cst_136 = arith.constant dense<0.000000e+00> : vector<128xf32>
    %290 = vector.multi_reduction <add>, %289, %cst_136 [0] : vector<8x128xf32> to vector<128xf32>
    %291 = vector.shape_cast %290 : vector<128xf32> to vector<1x128xf32>
    %c0_137 = arith.constant 0 : index
    %c0_138 = arith.constant 0 : index
    %c274 = arith.constant 274 : index
    %292 = vector.load %arg1[%c0_137, %c0_138, %c274] : memref<1x8x512xf32, #tpu.memory_space<vmem>>, vector<1x8x128xf32>
    %293 = vector.shape_cast %292 : vector<1x8x128xf32> to vector<8x128xf32>
    %294 = arith.mulf %286, %293 : vector<8x128xf32>
    %cst_139 = arith.constant dense<0.000000e+00> : vector<128xf32>
    %295 = vector.multi_reduction <add>, %294, %cst_139 [0] : vector<8x128xf32> to vector<128xf32>
    %296 = vector.shape_cast %295 : vector<128xf32> to vector<1x128xf32>
    %297 = arith.maximumf %291, %296 : vector<1x128xf32>
    %c0_140 = arith.constant 0 : index
    %c0_141 = arith.constant 0 : index
    %c275 = arith.constant 275 : index
    %298 = vector.load %arg1[%c0_140, %c0_141, %c275] : memref<1x8x512xf32, #tpu.memory_space<vmem>>, vector<1x8x128xf32>
    %299 = vector.shape_cast %298 : vector<1x8x128xf32> to vector<8x128xf32>
    %300 = arith.mulf %286, %299 : vector<8x128xf32>
    %cst_142 = arith.constant dense<0.000000e+00> : vector<128xf32>
    %301 = vector.multi_reduction <add>, %300, %cst_142 [0] : vector<8x128xf32> to vector<128xf32>
    %302 = vector.shape_cast %301 : vector<128xf32> to vector<1x128xf32>
    %303 = arith.maximumf %297, %302 : vector<1x128xf32>
    %c0_143 = arith.constant 0 : index
    %c0_144 = arith.constant 0 : index
    %c291 = arith.constant 291 : index
    %304 = vector.load %arg1[%c0_143, %c0_144, %c291] : memref<1x8x512xf32, #tpu.memory_space<vmem>>, vector<1x8x128xf32>
    %305 = vector.shape_cast %304 : vector<1x8x128xf32> to vector<8x128xf32>
    %306 = arith.mulf %286, %305 : vector<8x128xf32>
    %cst_145 = arith.constant dense<0.000000e+00> : vector<128xf32>
    %307 = vector.multi_reduction <add>, %306, %cst_145 [0] : vector<8x128xf32> to vector<128xf32>
    %308 = vector.shape_cast %307 : vector<128xf32> to vector<1x128xf32>
    %309 = arith.maximumf %303, %308 : vector<1x128xf32>
    %c0_146 = arith.constant 0 : index
    %c0_147 = arith.constant 0 : index
    %c292_148 = arith.constant 292 : index
    %310 = vector.load %arg1[%c0_146, %c0_147, %c292_148] : memref<1x8x512xf32, #tpu.memory_space<vmem>>, vector<1x8x128xf32>
    %311 = vector.shape_cast %310 : vector<1x8x128xf32> to vector<8x128xf32>
    %312 = arith.mulf %286, %311 : vector<8x128xf32>
    %cst_149 = arith.constant dense<0.000000e+00> : vector<128xf32>
    %313 = vector.multi_reduction <add>, %312, %cst_149 [0] : vector<8x128xf32> to vector<128xf32>
    %314 = vector.shape_cast %313 : vector<128xf32> to vector<1x128xf32>
    %315 = arith.maximumf %309, %314 : vector<1x128xf32>
    %c0_150 = arith.constant 0 : index
    %c0_151 = arith.constant 0 : index
    %c293 = arith.constant 293 : index
    %316 = vector.load %arg1[%c0_150, %c0_151, %c293] : memref<1x8x512xf32, #tpu.memory_space<vmem>>, vector<1x8x128xf32>
    %317 = vector.shape_cast %316 : vector<1x8x128xf32> to vector<8x128xf32>
    %318 = arith.mulf %286, %317 : vector<8x128xf32>
    %cst_152 = arith.constant dense<0.000000e+00> : vector<128xf32>
    %319 = vector.multi_reduction <add>, %318, %cst_152 [0] : vector<8x128xf32> to vector<128xf32>
    %320 = vector.shape_cast %319 : vector<128xf32> to vector<1x128xf32>
    %321 = arith.maximumf %315, %320 : vector<1x128xf32>
    %c0_153 = arith.constant 0 : index
    %c0_154 = arith.constant 0 : index
    %c309 = arith.constant 309 : index
    %322 = vector.load %arg1[%c0_153, %c0_154, %c309] : memref<1x8x512xf32, #tpu.memory_space<vmem>>, vector<1x8x128xf32>
    %323 = vector.shape_cast %322 : vector<1x8x128xf32> to vector<8x128xf32>
    %324 = arith.mulf %286, %323 : vector<8x128xf32>
    %cst_155 = arith.constant dense<0.000000e+00> : vector<128xf32>
    %325 = vector.multi_reduction <add>, %324, %cst_155 [0] : vector<8x128xf32> to vector<128xf32>
    %326 = vector.shape_cast %325 : vector<128xf32> to vector<1x128xf32>
    %327 = arith.maximumf %321, %326 : vector<1x128xf32>
    %c0_156 = arith.constant 0 : index
    %c0_157 = arith.constant 0 : index
    %c310 = arith.constant 310 : index
    %328 = vector.load %arg1[%c0_156, %c0_157, %c310] : memref<1x8x512xf32, #tpu.memory_space<vmem>>, vector<1x8x128xf32>
    %329 = vector.shape_cast %328 : vector<1x8x128xf32> to vector<8x128xf32>
    %330 = arith.mulf %286, %329 : vector<8x128xf32>
    %cst_158 = arith.constant dense<0.000000e+00> : vector<128xf32>
    %331 = vector.multi_reduction <add>, %330, %cst_158 [0] : vector<8x128xf32> to vector<128xf32>
    %332 = vector.shape_cast %331 : vector<128xf32> to vector<1x128xf32>
    %333 = arith.maximumf %327, %332 : vector<1x128xf32>
    %c0_159 = arith.constant 0 : index
    %c0_160 = arith.constant 0 : index
    %c311 = arith.constant 311 : index
    %334 = vector.load %arg1[%c0_159, %c0_160, %c311] : memref<1x8x512xf32, #tpu.memory_space<vmem>>, vector<1x8x128xf32>
    %335 = vector.shape_cast %334 : vector<1x8x128xf32> to vector<8x128xf32>
    %336 = arith.mulf %286, %335 : vector<8x128xf32>
    %cst_161 = arith.constant dense<0.000000e+00> : vector<128xf32>
    %337 = vector.multi_reduction <add>, %336, %cst_161 [0] : vector<8x128xf32> to vector<128xf32>
    %338 = vector.shape_cast %337 : vector<128xf32> to vector<1x128xf32>
    %339 = arith.maximumf %333, %338 : vector<1x128xf32>
    %cst_162 = arith.constant 0.000000e+00 : f32
    %340 = vector.broadcast %cst_162 : f32 to vector<1x128xf32>
    %cst_163 = arith.constant 0.000000e+00 : f32
    %341 = vector.broadcast %cst_163 : f32 to vector<8x128xf32>
    %c0_164 = arith.constant 0 : index
    %c0_165 = arith.constant 0 : index
    %c273_166 = arith.constant 273 : index
    %342 = vector.load %arg1[%c0_164, %c0_165, %c273_166] : memref<1x8x512xf32, #tpu.memory_space<vmem>>, vector<1x8x128xf32>
    %343 = vector.shape_cast %342 : vector<1x8x128xf32> to vector<8x128xf32>
    %344 = arith.subf %291, %339 : vector<1x128xf32>
    %345 = math.exp %344 : vector<1x128xf32>
    %346 = arith.addf %340, %345 : vector<1x128xf32>
    %347 = vector.broadcast %345 : vector<1x128xf32> to vector<8x128xf32>
    %348 = arith.mulf %347, %343 : vector<8x128xf32>
    %349 = arith.addf %341, %348 : vector<8x128xf32>
    %c0_167 = arith.constant 0 : index
    %c0_168 = arith.constant 0 : index
    %c274_169 = arith.constant 274 : index
    %350 = vector.load %arg1[%c0_167, %c0_168, %c274_169] : memref<1x8x512xf32, #tpu.memory_space<vmem>>, vector<1x8x128xf32>
    %351 = vector.shape_cast %350 : vector<1x8x128xf32> to vector<8x128xf32>
    %352 = arith.subf %296, %339 : vector<1x128xf32>
    %353 = math.exp %352 : vector<1x128xf32>
    %354 = arith.addf %346, %353 : vector<1x128xf32>
    %355 = vector.broadcast %353 : vector<1x128xf32> to vector<8x128xf32>
    %356 = arith.mulf %355, %351 : vector<8x128xf32>
    %357 = arith.addf %349, %356 : vector<8x128xf32>
    %c0_170 = arith.constant 0 : index
    %c0_171 = arith.constant 0 : index
    %c275_172 = arith.constant 275 : index
    %358 = vector.load %arg1[%c0_170, %c0_171, %c275_172] : memref<1x8x512xf32, #tpu.memory_space<vmem>>, vector<1x8x128xf32>
    %359 = vector.shape_cast %358 : vector<1x8x128xf32> to vector<8x128xf32>
    %360 = arith.subf %302, %339 : vector<1x128xf32>
    %361 = math.exp %360 : vector<1x128xf32>
    %362 = arith.addf %354, %361 : vector<1x128xf32>
    %363 = vector.broadcast %361 : vector<1x128xf32> to vector<8x128xf32>
    %364 = arith.mulf %363, %359 : vector<8x128xf32>
    %365 = arith.addf %357, %364 : vector<8x128xf32>
    %c0_173 = arith.constant 0 : index
    %c0_174 = arith.constant 0 : index
    %c291_175 = arith.constant 291 : index
    %366 = vector.load %arg1[%c0_173, %c0_174, %c291_175] : memref<1x8x512xf32, #tpu.memory_space<vmem>>, vector<1x8x128xf32>
    %367 = vector.shape_cast %366 : vector<1x8x128xf32> to vector<8x128xf32>
    %368 = arith.subf %308, %339 : vector<1x128xf32>
    %369 = math.exp %368 : vector<1x128xf32>
    %370 = arith.addf %362, %369 : vector<1x128xf32>
    %371 = vector.broadcast %369 : vector<1x128xf32> to vector<8x128xf32>
    %372 = arith.mulf %371, %367 : vector<8x128xf32>
    %373 = arith.addf %365, %372 : vector<8x128xf32>
    %c0_176 = arith.constant 0 : index
    %c0_177 = arith.constant 0 : index
    %c292_178 = arith.constant 292 : index
    %374 = vector.load %arg1[%c0_176, %c0_177, %c292_178] : memref<1x8x512xf32, #tpu.memory_space<vmem>>, vector<1x8x128xf32>
    %375 = vector.shape_cast %374 : vector<1x8x128xf32> to vector<8x128xf32>
    %376 = arith.subf %314, %339 : vector<1x128xf32>
    %377 = math.exp %376 : vector<1x128xf32>
    %378 = arith.addf %370, %377 : vector<1x128xf32>
    %379 = vector.broadcast %377 : vector<1x128xf32> to vector<8x128xf32>
    %380 = arith.mulf %379, %375 : vector<8x128xf32>
    %381 = arith.addf %373, %380 : vector<8x128xf32>
    %c0_179 = arith.constant 0 : index
    %c0_180 = arith.constant 0 : index
    %c293_181 = arith.constant 293 : index
    %382 = vector.load %arg1[%c0_179, %c0_180, %c293_181] : memref<1x8x512xf32, #tpu.memory_space<vmem>>, vector<1x8x128xf32>
    %383 = vector.shape_cast %382 : vector<1x8x128xf32> to vector<8x128xf32>
    %384 = arith.subf %320, %339 : vector<1x128xf32>
    %385 = math.exp %384 : vector<1x128xf32>
    %386 = arith.addf %378, %385 : vector<1x128xf32>
    %387 = vector.broadcast %385 : vector<1x128xf32> to vector<8x128xf32>
    %388 = arith.mulf %387, %383 : vector<8x128xf32>
    %389 = arith.addf %381, %388 : vector<8x128xf32>
    %c0_182 = arith.constant 0 : index
    %c0_183 = arith.constant 0 : index
    %c309_184 = arith.constant 309 : index
    %390 = vector.load %arg1[%c0_182, %c0_183, %c309_184] : memref<1x8x512xf32, #tpu.memory_space<vmem>>, vector<1x8x128xf32>
    %391 = vector.shape_cast %390 : vector<1x8x128xf32> to vector<8x128xf32>
    %392 = arith.subf %326, %339 : vector<1x128xf32>
    %393 = math.exp %392 : vector<1x128xf32>
    %394 = arith.addf %386, %393 : vector<1x128xf32>
    %395 = vector.broadcast %393 : vector<1x128xf32> to vector<8x128xf32>
    %396 = arith.mulf %395, %391 : vector<8x128xf32>
    %397 = arith.addf %389, %396 : vector<8x128xf32>
    %c0_185 = arith.constant 0 : index
    %c0_186 = arith.constant 0 : index
    %c310_187 = arith.constant 310 : index
    %398 = vector.load %arg1[%c0_185, %c0_186, %c310_187] : memref<1x8x512xf32, #tpu.memory_space<vmem>>, vector<1x8x128xf32>
    %399 = vector.shape_cast %398 : vector<1x8x128xf32> to vector<8x128xf32>
    %400 = arith.subf %332, %339 : vector<1x128xf32>
    %401 = math.exp %400 : vector<1x128xf32>
    %402 = arith.addf %394, %401 : vector<1x128xf32>
    %403 = vector.broadcast %401 : vector<1x128xf32> to vector<8x128xf32>
    %404 = arith.mulf %403, %399 : vector<8x128xf32>
    %405 = arith.addf %397, %404 : vector<8x128xf32>
    %c0_188 = arith.constant 0 : index
    %c0_189 = arith.constant 0 : index
    %c311_190 = arith.constant 311 : index
    %406 = vector.load %arg1[%c0_188, %c0_189, %c311_190] : memref<1x8x512xf32, #tpu.memory_space<vmem>>, vector<1x8x128xf32>
    %407 = vector.shape_cast %406 : vector<1x8x128xf32> to vector<8x128xf32>
    %408 = arith.subf %338, %339 : vector<1x128xf32>
    %409 = math.exp %408 : vector<1x128xf32>
    %410 = arith.addf %402, %409 : vector<1x128xf32>
    %411 = vector.broadcast %409 : vector<1x128xf32> to vector<8x128xf32>
    %412 = arith.mulf %411, %407 : vector<8x128xf32>
    %413 = arith.addf %405, %412 : vector<8x128xf32>
    %414 = tpu.reciprocal %410 {approx = true} : vector<1x128xf32> -> vector<1x128xf32>
    %415 = arith.mulf %410, %414 : vector<1x128xf32>
    %cst_191 = arith.constant 2.000000e+00 : f32
    %416 = vector.broadcast %cst_191 : f32 to vector<1x128xf32>
    %417 = arith.subf %416, %415 : vector<1x128xf32>
    %418 = arith.mulf %414, %417 : vector<1x128xf32>
    %cst_192 = arith.constant dense<0.000000e+00> : vector<8x128xf32>
    %419 = tpu.matmul %1, %413, %cst_192 {dimension_numbers = #tpu.dot_dimension_numbers<[1], [0], [0], [1], [0, 0, 1, 1], [], []>, precision = #tpu.contract_precision<fp32>} : vector<8x8xf32>, vector<8x128xf32>, vector<8x128xf32> -> vector<8x128xf32>
    %420 = vector.broadcast %418 : vector<1x128xf32> to vector<8x128xf32>
    %421 = arith.mulf %419, %420 : vector<8x128xf32>
    %c0_193 = arith.constant 0 : index
    %c0_194 = arith.constant 0 : index
    %c256 = arith.constant 256 : index
    %422 = vector.load %arg4[%c0_193, %c0_194, %c256] : memref<1x8x384xf32, #tpu.memory_space<vmem>>, vector<1x8x128xf32>
    %423 = vector.shape_cast %422 : vector<1x8x128xf32> to vector<8x128xf32>
    %424 = vector.shape_cast %421 : vector<8x128xf32> to vector<1x8x128xf32>
    tpu.vector_store %arg4[%c0_193, %c0_194, %c256], %424 {strides = array<i32>} : memref<1x8x384xf32, #tpu.memory_space<vmem>>, vector<1x8x128xf32>,
    return
  }
  func.func @transform_0(%arg0: i32) -> (i32, i32, i32) {
    %c0_i32 = arith.constant 0 : i32
    %c0_i32_0 = arith.constant 0 : i32
    %c0_i32_1 = arith.constant 0 : i32
    return %arg0, %c0_i32, %c0_i32_0 : i32, i32, i32
  }
  func.func @transform_1(%arg0: i32) -> (i32, i32) {
    %c0_i32 = arith.constant 0 : i32
    %c0_i32_0 = arith.constant 0 : i32
    %c0_i32_1 = arith.constant 0 : i32
    return %c0_i32, %c0_i32_0 : i32, i32
  }
  func.func @transform_2(%arg0: i32) -> (i32, i32) {
    %c0_i32 = arith.constant 0 : i32
    %c0_i32_0 = arith.constant 0 : i32
    %c0_i32_1 = arith.constant 0 : i32
    return %c0_i32, %c0_i32_0 : i32, i32
  }
  func.func @transform_3(%arg0: i32) -> (i32, i32, i32) {
    %c0_i32 = arith.constant 0 : i32
    %c0_i32_0 = arith.constant 0 : i32
    %c0_i32_1 = arith.constant 0 : i32
    return %arg0, %c0_i32, %c0_i32_0 : i32, i32, i32
  }
}

</mosaic_0001>

<bundles_post_ra>
// kernel: local_attention.1
= control target key start
LH: loop header
LB: loop body
LE: loop exit
PB: predicated region body
PF: predicated region fallthrough
CT: control target
= control target key end

     0   :  { %s3869_s12 = smov 0   ;;  %s4291_s0 = inlined_call_operand.vmem [shape: f32[2,8,512], index: 0, kind: input, shape index: {}]   ;;  %s4292_s1 = inlined_call_operand.vmem [shape: f32[8,8], index: 1, kind: input, shape index: {}]   ;;  %s4293_s2 = inlined_call_operand.vmem [shape: f32[8,8], index: 2, kind: input, shape index: {}]   ;;  %s4294_s3 = inlined_call_operand.vmem [shape: f32[2,8,384], index: 3, kind: output, shape index: {}]  }
   0x1 LB: > { %s3487_s13 = sadd.s32 4294967295, %s3836_s12   ;;  %p3491_p0 = scmp.ge.s32.totalorder %s3836_s12, 1  ;;  %s3836_s12 = sphi %s3869_s12, %s13_s12  }
   0x2   : > { %p137_p1 = scmp.lt.s32.totalorder %s3836_s12, 3 }
   0x4   : > { %p138_p2 = pnand %p3491_p0, %p137_p1 }
   0x5   : > { %p161_p3 = scmp.lt.s32.totalorder (!%p138_p2), %s3487_s13, 1  ;;  %s3840_s18 = smov (!%p138_p2), 92  }
   0x6   : > { %141 = sbr.rel (%p138_p2) target bundleno = 1219 (0x4c3), region = 32  ;;  %s3841_s19 = smov (!%p138_p2), 111  }
   0x7   : > { %s3842_s20 = smov (!%p138_p2), 110   ;;  %s3843_s21 = smov (!%p138_p2), 109  }
   0x8   : > { %s3844_s22 = smov (!%p138_p2), 93   ;;  %s3845_s23 = smov (!%p138_p2), 91  }
   0x9   : > { %s3846_s24 = smov (!%p138_p2), 75   ;;  %s3847_s25 = smov (!%p138_p2), 74  }
   0xa   : > { %s3848_s26 = smov (!%p138_p2), 73  }
   0xb   : > { %v3838_v0 = vmov 0.0   ;;  %vm3839_vm0 = vmmov 0   ;;  %s4296_s13 = smov (!%p161_p3, %s3487_s13), 1  ;;  %v171_v4 = vld [vmem:[%s4292_s1] sm:$0xff]  ;;  %vm184_vm1 = vcmask 64512   ;;  %vm181_vm2 = vcmask 752640  }
   0xc   : > { %3570 = vmatprep.subr.mxu0 %v3838_v0  ;;  %3572 = vmatprep.mubr.msk.f32.mxu0 %vm3839_vm0, %v3838_v0  ;;  %s3497_s14 = sshll.u32 %s4296_s13, 5  ;;  %v186_v5 = vsel %vm184_vm1, %v171_v4, 0  ;;  %vm638_vm3 = vcmask 908288   ;;  %vm705_vm4 = vcmask 744448   ;;  %vm720_vm5 = vcmask 613376   ;;  %s3750_s4 = smul.u32 24, %s4296_s13 }
   0xd   : > { %3575 = vmatprep.subr.mxu1 %v3838_v0  ;;  %3577 = vmatprep.mubr.msk.f32.mxu1 %vm3839_vm0, %v3838_v0  ;;  %s3889_s17 = scalar_lea.vmem %s4291_s0, %s3497_s14  ;;  %v3941_v6 = vand.u32 4294901760, %v186_v5  ;;  %vm735_vm6 = vcmask 605184   ;;  %vm652_vm7 = vcmask 900096   ;;  %vm667_vm8 = vcmask 891904  }
   0xe   : > { %v173_v1 = vld [vmem:[%s3889_s17] sm:$0xff]  ;;  %v174_v2 = vld [vmem:[%s3889_s17 + $0x8] sm:$0xff]  ;;  %v1271_v3 = vld [vmem:[%s3889_s17 + $0x10] sm:$0xff]  ;;  %vm682_vm9 = vcmask 760832   ;;  %vm750_vm10 = vcmask 596992   ;;  %s4124_s7 = scalar_lea.vmem %s4294_s3, %s3750_s4 }
   0xf   : > { %177 = vrot.lane.b32.xlu0 %v173_v1, %s3840_s18  ;;  %634 = vrot.lane.b32.xlu1 %v173_v1, %s3841_s19  ;;  %v3945_v7 = vsub.f32 %v186_v5, %v3941_v6  ;;  %v3985_v23 = vld [vmem:[%s3889_s17 + $0x18] sm:$0xff] }
  0x11   : > { %v3949_v8 = vand.u32 4294901760, %v3945_v7 }
  0x13   : > { %179 = vrot.lane.b32.xlu0 %v174_v2, %s3840_s18  ;;  %636 = vrot.lane.b32.xlu1 %v174_v2, %s3841_s19  ;;  %v257_v10 = vsub.f32 %v3945_v7, %v3949_v8 }
  0x15   : > { %v3956_v13 = vand.u32 4294901760, %v257_v10 }
  0x17   : > { %648 = vrot.lane.b32.xlu0 %v173_v1, %s3842_s20  ;;  %650 = vrot.lane.b32.xlu1 %v174_v2, %s3842_s20 }
  0x1b   : > { %663 = vrot.lane.b32.xlu0 %v173_v1, %s3843_s21  ;;  %665 = vrot.lane.b32.xlu1 %v174_v2, %s3843_s21 }
  0x1f   : > { %678 = vrot.lane.b32.xlu0 %v173_v1, %s3844_s22  ;;  %680 = vrot.lane.b32.xlu1 %v174_v2, %s3844_s22 }
  0x23   : > { %701 = vrot.lane.b32.xlu0 %v173_v1, %s3845_s23  ;;  %703 = vrot.lane.b32.xlu1 %v174_v2, %s3845_s23 }
  0x27   : > { %716 = vrot.lane.b32.xlu0 %v173_v1, %s3846_s24  ;;  %718 = vrot.lane.b32.xlu1 %v174_v2, %s3846_s24 }
  0x2b   : > { %731 = vrot.lane.b32.xlu0 %v173_v1, %s3847_s25  ;;  %733 = vrot.lane.b32.xlu1 %v174_v2, %s3847_s25 }
  0x2f   : > { %746 = vrot.lane.b32.xlu0 %v173_v1, %s3848_s26  ;;  %748 = vrot.lane.b32.xlu1 %v174_v2, %s3848_s26 }
  0x33   : > { %1274 = vrot.lane.b32.xlu0 %v174_v2, %s3840_s18  ;;  %1276 = vrot.lane.b32.xlu1 %v1271_v3, %s3840_s18 }
  0x37   : > { %1726 = vrot.lane.b32.xlu0 %v174_v2, %s3841_s19  ;;  %1728 = vrot.lane.b32.xlu1 %v1271_v3, %s3841_s19 }
  0x3b   : > { %1739 = vrot.lane.b32.xlu0 %v174_v2, %s3842_s20  ;;  %1741 = vrot.lane.b32.xlu1 %v1271_v3, %s3842_s20 }
  0x3f   : > { %1753 = vrot.lane.b32.xlu0 %v174_v2, %s3843_s21  ;;  %1755 = vrot.lane.b32.xlu1 %v1271_v3, %s3843_s21 }
  0x43   : > { %1767 = vrot.lane.b32.xlu0 %v174_v2, %s3844_s22  ;;  %1769 = vrot.lane.b32.xlu1 %v1271_v3, %s3844_s22 }
  0x47   : > { %1789 = vrot.lane.b32.xlu0 %v174_v2, %s3845_s23  ;;  %1791 = vrot.lane.b32.xlu1 %v1271_v3, %s3845_s23 }
  0x4b   : > { %1803 = vrot.lane.b32.xlu0 %v174_v2, %s3846_s24  ;;  %1805 = vrot.lane.b32.xlu1 %v1271_v3, %s3846_s24 }
  0x4f   : > { %1817 = vrot.lane.b32.xlu0 %v174_v2, %s3847_s25  ;;  %1819 = vrot.lane.b32.xlu1 %v1271_v3, %s3847_s25 }
  0x53   : > { %1831 = vrot.lane.b32.xlu0 %v174_v2, %s3848_s26  ;;  %1833 = vrot.lane.b32.xlu1 %v1271_v3, %s3848_s26 }
  0x57   : > { %2355 = vrot.lane.b32.xlu0 %v1271_v3, %s3840_s18  ;;  %2357 = vrot.lane.b32.xlu1 %v3985_v23, %s3840_s18 }
  0x5b   : > { %2807 = vrot.lane.b32.xlu0 %v1271_v3, %s3841_s19  ;;  %2809 = vrot.lane.b32.xlu1 %v3985_v23, %s3841_s19 }
  0x5f   : > { %2820 = vrot.lane.b32.xlu0 %v1271_v3, %s3842_s20  ;;  %2822 = vrot.lane.b32.xlu1 %v3985_v23, %s3842_s20 }
  0x63   : > { %2834 = vrot.lane.b32.xlu0 %v1271_v3, %s3843_s21  ;;  %2836 = vrot.lane.b32.xlu1 %v3985_v23, %s3843_s21 }
  0x67   : > { %2848 = vrot.lane.b32.xlu0 %v1271_v3, %s3844_s22  ;;  %2850 = vrot.lane.b32.xlu1 %v3985_v23, %s3844_s22 }
  0x6b   : > { %2870 = vrot.lane.b32.xlu0 %v1271_v3, %s3845_s23  ;;  %2872 = vrot.lane.b32.xlu1 %v3985_v23, %s3845_s23 }
  0x6f   : > { %2884 = vrot.lane.b32.xlu0 %v1271_v3, %s3846_s24  ;;  %2886 = vrot.lane.b32.xlu1 %v3985_v23, %s3846_s24 }
  0x73   : > { %2898 = vrot.lane.b32.xlu0 %v1271_v3, %s3847_s25  ;;  %2900 = vrot.lane.b32.xlu1 %v3985_v23, %s3847_s25 }
  0x77   : > { %2912 = vrot.lane.b32.xlu0 %v1271_v3, %s3848_s26  ;;  %2914 = vrot.lane.b32.xlu1 %v3985_v23, %s3848_s26 }
  0x81   : > { %v178_v9 = vpop.permute.xlu0 %177  ;;  %v635_v19 = vpop.permute.xlu1 %634 }
  0x85   : > { %v180_v11 = vpop.permute.xlu0 %179  ;;  %v637_v20 = vpop.permute.xlu1 %636 }
  0x86   : > { %v3954_v12 = vsel %vm181_vm2, %v178_v9, %v180_v11  ;;  %v4011_v53 = vsel %vm638_vm3, %v635_v19, %v637_v20 }
  0x87   : > { %v219_v14 = vand.u32 4294901760, %v3954_v12 }
  0x89   : > { %v296_v15 = vsub.f32 %v3954_v12, %v219_v14  ;;  %3571 = vmatpush3.msra.mxu0 %v219_v14  ;;  %v651_v21 = vpop.permute.xlu1 %650  ;;  %v649_v22 = vpop.permute.xlu0 %648 }
  0x8a   : > { %3573 = vmatmul.mubr.f32.vlgmr.msra.gmra.mxu0 %v3956_v13  ;;  %3580 = vmatprep.subr.mxu0 %v3838_v0  ;;  %v4014_v54 = vsel %vm652_vm7, %v649_v22, %v651_v21 }
  0x8b   : > { %3581 = vmatpush3.msra.mxu0 %v296_v15  ;;  %3582 = vmatprep.mubr.msk.f32.mxu0 %vm3839_vm0, %v3838_v0  ;;  %v297_v16 = vand.u32 4294901760, %v296_v15 }
  0x8c   : > { %3590 = vmatprep.subr.mxu0 %v3838_v0 }
  0x8d   : > { %v298_v17 = vsub.f32 %v296_v15, %v297_v16  ;;  %v666_v24 = vpop.permute.xlu1 %665  ;;  %v664_v25 = vpop.permute.xlu0 %663 }
  0x8e   : > { %3583 = vmatmul.mubr.f32.vlgmr.msra.gmra.mxu0 %v3945_v7  ;;  %v4017_v55 = vsel %vm667_vm8, %v664_v25, %v666_v24 }
  0x8f   : > { %3591 = vmatpush3.msra.mxu0 %v297_v16  ;;  %v299_v18 = vand.u32 4294901760, %v298_v17  ;;  %3592 = vmatprep.mubr.msk.f32.mxu0 %vm3839_vm0, %v3838_v0 }
  0x90   : > { %3600 = vmatprep.subr.mxu0 %v3838_v0 }
  0x91   : > { %3576 = vmatpush3.msra.mxu1 %v299_v18  ;;  %v681_v26 = vpop.permute.xlu1 %680  ;;  %v679_v27 = vpop.permute.xlu0 %678 }
  0x92   : > { %3578 = vmatmul.mubr.f32.vlgmr.msra.gmra.mxu1 %v3941_v6  ;;  %3585 = vmatprep.subr.mxu1 %v3838_v0  ;;  %v4020_v56 = vsel %vm682_vm9, %v679_v27, %v681_v26 }
  0x93   : > { %3586 = vmatpush3.msra.mxu1 %v219_v14  ;;  %3587 = vmatprep.mubr.msk.f32.mxu1 %vm3839_vm0, %v3838_v0 }
  0x94   : > { %3595 = vmatprep.subr.mxu1 %v3838_v0  ;;  %3593 = vmatmul.mubr.f32.vlgmr.msra.gmra.mxu0 %v3941_v6 }
  0x95   : > { %3602 = vmatprep.mubr.msk.f32.mxu0 %vm3839_vm0, %v3838_v0  ;;  %v704_v30 = vpop.permute.xlu1 %703  ;;  %v702_v31 = vpop.permute.xlu0 %701 }
  0x96   : > { %3588 = vmatmul.mubr.f32.vlgmr.msra.gmra.mxu1 %v3949_v8  ;;  %v4002_v49 = vsel %vm705_vm4, %v702_v31, %v704_v30 }
  0x97   : > { %3596 = vmatpush3.msra.mxu1 %v219_v14  ;;  %3597 = vmatprep.mubr.msk.f32.mxu1 %vm3839_vm0, %v3838_v0 }
  0x98   : > { %3605 = vmatprep.subr.mxu1 %v3838_v0 }
  0x99   : > { %v719_v36 = vpop.permute.xlu1 %718  ;;  %v717_v37 = vpop.permute.xlu0 %716 }
  0x9a   : > { %3598 = vmatmul.mubr.f32.vlgmr.msra.gmra.mxu1 %v3941_v6  ;;  %v4005_v50 = vsel %vm720_vm5, %v717_v37, %v719_v36 }
  0x9b   : > { %3607 = vmatprep.mubr.msk.f32.mxu1 %vm3839_vm0, %v3838_v0 }
  0x9d   : > { %v734_v46 = vpop.permute.xlu1 %733  ;;  %v732_v47 = vpop.permute.xlu0 %731 }
  0x9e   : > { %v4008_v51 = vsel %vm735_vm6, %v732_v47, %v734_v46 }
  0xa1   : > { %v749_v31 = vpop.permute.xlu1 %748 }
 0x14a   : > { %v260_v28 = vpop.f32.mrf.mxu0 }
 0x14c   : > { %v3574_v29 = vpop.f32.mrf.mxu0 }
 0x14e   : > { %v410_v32 = vpop.f32.mrf.mxu0 }
 0x150   : > { %v3584_v33 = vpop.f32.mrf.mxu0 }
 0x152   : > { %v336_v34 = vpop.f32.mrf.mxu1 }
 0x153   : > { %v337_v35 = vadd.f32 %v336_v34, %v260_v28 }
 0x154   : > { %v3579_v38 = vpop.f32.mrf.mxu1  ;;  %v558_v39 = vpop.f32.mrf.mxu0 }
 0x155   : > { %v411_v40 = vadd.f32 %v410_v32, %v337_v35  ;;  %v747_v35 = vpop.permute.xlu0 %746 }
 0x156   : > { %v484_v41 = vpop.f32.mrf.mxu1  ;;  %v3594_v42 = vpop.f32.mrf.mxu0 }
 0x157   : > { %v485_v43 = vadd.f32 %v484_v41, %v411_v40  ;;  %v4035_v42 = vsel %vm750_vm10, %v747_v35, %v749_v31 }
 0x158   : > { %v3589_v44 = vpop.f32.mrf.mxu1 }
 0x159   : > { %v559_v45 = vadd.f32 %v558_v39, %v485_v43 }
 0x15a   : > { %v630_v48 = vpop.f32.mrf.mxu1 }
 0x15b   : > { %v631_v52 = vadd.f32 %v630_v48, %v559_v45 }
 0x15c   : > { %v3599_v57 = vpop.f32.mrf.mxu1 }
 0x15d   : > { %v641_v58 = vmul.f32 %v4011_v53, %v631_v52  ;;  %v655_v59 = vmul.f32 %v4014_v54, %v631_v52  ;;  %v670_v60 = vmul.f32 %v4017_v55, %v631_v52  ;;  %v685_v61 = vmul.f32 %v4020_v56, %v631_v52 }
 0x15e   : > { %v693_v62 = vmul.f32 %v631_v52, %v3954_v12  ;;  %v708_v63 = vmul.f32 %v4002_v49, %v631_v52  ;;  %v723_v1 = vmul.f32 %v4005_v50, %v631_v52  ;;  %v738_v2 = vmul.f32 %v4008_v51, %v631_v52 }
 0x15f   : > { %v642_v3 = vrot.slane %v641_v58, 4  ;;  %v656_v4 = vrot.slane %v655_v59, 4  ;;  %v671_v5 = vrot.slane %v670_v60, 4  ;;  %v686_v9 = vrot.slane %v685_v61, 4 }
 0x160   : > { %v694_v10 = vrot.slane %v693_v62, 4  ;;  %v709_v11 = vrot.slane %v708_v63, 4  ;;  %v724_v14 = vrot.slane %v723_v1, 4  ;;  %v739_v15 = vrot.slane %v738_v2, 4 }
 0x161   : > { %v643_v16 = vadd.f32 %v642_v3, %v641_v58  ;;  %v657_v17 = vadd.f32 %v656_v4, %v655_v59  ;;  %v672_v18 = vadd.f32 %v671_v5, %v670_v60  ;;  %v687_v19 = vadd.f32 %v686_v9, %v685_v61 }
 0x162   : > { %v695_v20 = vadd.f32 %v694_v10, %v693_v62  ;;  %v710_v21 = vadd.f32 %v709_v11, %v708_v63  ;;  %v725_v22 = vadd.f32 %v724_v14, %v723_v1  ;;  %v740_v30 = vadd.f32 %v739_v15, %v738_v2 }
 0x163   : > { %v644_v24 = vrot.slane %v643_v16, 2  ;;  %v658_v25 = vrot.slane %v657_v17, 2  ;;  %v673_v26 = vrot.slane %v672_v18, 2  ;;  %v688_v27 = vrot.slane %v687_v19, 2 }
 0x164   : > { %v696_v28 = vrot.slane %v695_v20, 2  ;;  %v711_v29 = vrot.slane %v710_v21, 2  ;;  %v726_v36 = vrot.slane %v725_v22, 2  ;;  %v741_v41 = vrot.slane %v740_v30, 2 }
 0x165   : > { %v645_v32 = vadd.f32 %v644_v24, %v643_v16  ;;  %v659_v33 = vadd.f32 %v658_v25, %v657_v17  ;;  %v674_v34 = vadd.f32 %v673_v26, %v672_v18  ;;  %v689_v23 = vadd.f32 %v688_v27, %v687_v19 }
 0x166   : > { %v697_v40 = vadd.f32 %v696_v28, %v695_v20  ;;  %v712_v46 = vadd.f32 %v711_v29, %v710_v21  ;;  %v727_v47 = vadd.f32 %v726_v36, %v725_v22  ;;  %v753_v59 = vmul.f32 %v4035_v42, %v631_v52 }
 0x167   : > { %v646_v37 = vrot.slane %v645_v32, 1  ;;  %v660_v38 = vrot.slane %v659_v33, 1  ;;  %v675_v39 = vrot.slane %v674_v34, 1  ;;  %v690_v45 = vrot.slane %v689_v23, 1 }
 0x168   : > { %v698_v58 = vrot.slane %v697_v40, 1  ;;  %v742_v60 = vadd.f32 %v741_v41, %v740_v30  ;;  %v713_v63 = vrot.slane %v712_v46, 1  ;;  %v754_v1 = vrot.slane %v753_v59, 4  ;;  %v172_v41 = vld [vmem:[%s4293_s2] sm:$0xff] }
 0x169   : > { %v647_v43 = vadd.f32 %v646_v37, %v645_v32  ;;  %v661_v44 = vadd.f32 %v660_v38, %v659_v33  ;;  %v676_v57 = vadd.f32 %v675_v39, %v674_v34  ;;  %v691_v62 = vadd.f32 %v690_v45, %v689_v23 }
 0x16a   : > { %v699_v3 = vadd.f32 %v698_v58, %v697_v40  ;;  %v728_v4 = vrot.slane %v727_v47, 1  ;;  %v755_v5 = vadd.f32 %v754_v1, %v753_v59  ;;  %v714_v10 = vadd.f32 %v713_v63, %v712_v46 }
 0x16b   : > { %v662_v48 = vmax.f32 %v647_v43, %v661_v44  ;;  %v743_v11 = vrot.slane %v742_v60, 1 }
 0x16c   : > { %v756_v14 = vrot.slane %v755_v5, 2  ;;  %v729_v16 = vadd.f32 %v728_v4, %v727_v47 }
 0x16d   : > { %v677_v61 = vmax.f32 %v662_v48, %v676_v57  ;;  %v744_v19 = vadd.f32 %v743_v11, %v742_v60 }
 0x16e   : > { %v757_v17 = vadd.f32 %v756_v14, %v755_v5 }
 0x16f   : > { %v692_v2 = vmax.f32 %v677_v61, %v691_v62 }
 0x170   : > { %v758_v20 = vrot.slane %v757_v17, 1 }
 0x171   : > { %v700_v9 = vmax.f32 %v692_v2, %v699_v3 }
 0x172   : > { %v759_v21 = vadd.f32 %v758_v20, %v757_v17 }
 0x173   : > { %v715_v15 = vmax.f32 %v700_v9, %v714_v10 }
 0x175   : > { %v730_v18 = vmax.f32 %v715_v15, %v729_v16 }
 0x177   : > { %v745_v52 = vmax.f32 %v730_v18, %v744_v19 }
 0x179   : > { %v760_v22 = vmax.f32 %v745_v52, %v759_v21 }
 0x17b   : > { %v761_v24 = vsub.f32 %v647_v43, %v760_v22  ;;  %v767_v25 = vsub.f32 %v661_v44, %v760_v22  ;;  %v773_v26 = vsub.f32 %v676_v57, %v760_v22  ;;  %v779_v27 = vsub.f32 %v691_v62, %v760_v22 }
 0x17c   : > { %v785_v28 = vsub.f32 %v699_v3, %v760_v22  ;;  %v791_v33 = vsub.f32 %v714_v10, %v760_v22  ;;  %v797_v23 = vsub.f32 %v729_v16, %v760_v22  ;;  %v803_v36 = vsub.f32 %v744_v19, %v760_v22 }
 0x17d   : > { %v762_v29 = vmul.f32 1.442695, %v761_v24  ;;  %v768_v30 = vmul.f32 1.442695, %v767_v25  ;;  %v774_v31 = vmul.f32 1.442695, %v773_v26  ;;  %v809_v38 = vsub.f32 %v759_v21, %v760_v22  ;;  %v1277_v21 = vpop.permute.xlu1 %1276 }
 0x17e   : > { %v780_v32 = vmul.f32 1.442695, %v779_v27  ;;  %v786_v34 = vmul.f32 1.442695, %v785_v28  ;;  %v792_v35 = vmul.f32 1.442695, %v791_v33 }
 0x17f   : > { %3770 = vpow2.f32 %v762_v29  ;;  %v798_v37 = vmul.f32 1.442695, %v797_v23  ;;  %v804_v39 = vmul.f32 1.442695, %v803_v36  ;;  %v810_v40 = vmul.f32 1.442695, %v809_v38 }
 0x180   : > { %3772 = vpow2.f32 %v768_v30  ;;  %v820_v44 = vsel %vm184_vm1, %v172_v41, 0 }
 0x181   : > { %3774 = vpow2.f32 %v774_v31  ;;  %v4044_v59 = vand.u32 4294901760, %v820_v44  ;;  %v1729_v36 = vpop.permute.xlu1 %1728 }
 0x182   : > { %3776 = vpow2.f32 %v780_v32 }
 0x183   : > { %3778 = vpow2.f32 %v786_v34  ;;  %v4049_v5 = vsub.f32 %v820_v44, %v4044_v59 }
 0x184   : > { %3780 = vpow2.f32 %v792_v35 }
 0x185   : > { %3782 = vpow2.f32 %v798_v37  ;;  %v4054_v16 = vand.u32 4294901760, %v4049_v5  ;;  %v1742_v38 = vpop.permute.xlu1 %1741 }
 0x186   : > { %3784 = vpow2.f32 %v804_v39 }
 0x187   : > { %3786 = vpow2.f32 %v810_v40  ;;  %v891_v24 = vsub.f32 %v4049_v5, %v4054_v16 }
 0x189   : > { %v4066_v28 = vand.u32 4294901760, %v891_v24 }
 0x18c   : > { %v3771_v43 = vpop.eup %3770 }
 0x18d   : > { %v3773_v45 = vpop.eup %3772  ;;  %v765_v46 = vmul.f32 %v3771_v43, %v4011_v53 }
 0x18e   : > { %v3775_v47 = vpop.eup %3774  ;;  %v771_v48 = vmul.f32 %v3773_v45, %v4014_v54  ;;  %v770_v57 = vadd.f32 %v3773_v45, %v3771_v43  ;;  %v1756_v43 = vpop.permute.xlu1 %1755 }
 0x18f   : > { %v3777_v58 = vpop.eup %3776  ;;  %v777_v61 = vmul.f32 %v3775_v47, %v4017_v55 }
 0x190   : > { %v772_v60 = vadd.f32 %v771_v48, %v765_v46  ;;  %v776_v62 = vadd.f32 %v3775_v47, %v770_v57  ;;  %v3779_v63 = vpop.eup %3778  ;;  %v783_v2 = vmul.f32 %v3777_v58, %v4020_v56 }
 0x191   : > { %v3781_v4 = vpop.eup %3780  ;;  %v789_v54 = vmul.f32 %v3779_v63, %v3954_v12  ;;  %v1275_v12 = vpop.permute.xlu0 %1274 }
 0x192   : > { %v778_v1 = vadd.f32 %v777_v61, %v772_v60  ;;  %v782_v3 = vadd.f32 %v3777_v58, %v776_v62  ;;  %v3783_v10 = vpop.eup %3782  ;;  %v795_v14 = vmul.f32 %v3781_v4, %v4002_v49  ;;  %v4064_v27 = vsel %vm181_vm2, %v1275_v12, %v1277_v21  ;;  %v1770_v57 = vpop.permute.xlu1 %1769 }
 0x193   : > { %v3785_v55 = vpop.eup %3784  ;;  %v801_v56 = vmul.f32 %v3783_v10, %v4005_v50 }
 0x194   : > { %v784_v53 = vadd.f32 %v783_v2, %v778_v1  ;;  %v788_v9 = vadd.f32 %v3779_v63, %v782_v3  ;;  %v3787_v19 = vpop.eup %3786  ;;  %v807_v52 = vmul.f32 %v3785_v55, %v4008_v51  ;;  %v1311_v51 = vand.u32 4294901760, %v4064_v27 }
 0x195   : > { %v813_v25 = vmul.f32 %v3787_v19, %v4035_v42  ;;  %v1727_v37 = vpop.permute.xlu0 %1726 }
 0x196   : > { %v790_v11 = vadd.f32 %v789_v54, %v784_v53  ;;  %v794_v15 = vadd.f32 %v3781_v4, %v788_v9  ;;  %v1388_v42 = vsub.f32 %v4064_v27, %v1311_v51 }
 0x198   : > { %v796_v17 = vadd.f32 %v795_v14, %v790_v11  ;;  %v800_v18 = vadd.f32 %v3783_v10, %v794_v15  ;;  %v1389_v34 = vand.u32 4294901760, %v1388_v42  ;;  %v1792_v10 = vpop.permute.xlu1 %1791 }
 0x199   : > { %v1740_v39 = vpop.permute.xlu0 %1739 }
 0x19a   : > { %v802_v20 = vadd.f32 %v801_v56, %v796_v17  ;;  %v806_v22 = vadd.f32 %v3785_v55, %v800_v18  ;;  %v1390_v23 = vsub.f32 %v1388_v42, %v1389_v34 }
 0x19c   : > { %v808_v49 = vadd.f32 %v807_v52, %v802_v20  ;;  %v4061_v26 = vadd.f32 %v3787_v19, %v806_v22  ;;  %v1391_v35 = vand.u32 4294901760, %v1390_v23  ;;  %v1806_v22 = vpop.permute.xlu1 %1805 }
 0x19d   : > { %v1754_v44 = vpop.permute.xlu0 %1753 }
 0x19e   : > { %v814_v50 = vadd.f32 %v813_v25, %v808_v49  ;;  %3788 = vrcp.f32 %v4061_v26 }
 0x1a0   : > { %v853_v29 = vand.u32 4294901760, %v814_v50 }
 0x1a1   : > { %v1768_v61 = vpop.permute.xlu0 %1767 }
 0x1a2   : > { %v930_v30 = vsub.f32 %v814_v50, %v853_v29  ;;  %3601 = vmatpush3.msra.mxu0 %v853_v29 }
 0x1a3   : > { %3603 = vmatmul.mubr.f32.vlgmr.msra.gmra.mxu0 %v4066_v28  ;;  %3610 = vmatprep.subr.mxu0 %v3838_v0 }
 0x1a4   : > { %3611 = vmatpush3.msra.mxu0 %v930_v30  ;;  %3612 = vmatprep.mubr.msk.f32.mxu0 %vm3839_vm0, %v3838_v0  ;;  %v931_v31 = vand.u32 4294901760, %v930_v30 }
 0x1a5   : > { %3620 = vmatprep.subr.mxu0 %v3838_v0  ;;  %v1790_v14 = vpop.permute.xlu0 %1789 }
 0x1a6   : > { %v932_v32 = vsub.f32 %v930_v30, %v931_v31 }
 0x1a7   : > { %3613 = vmatmul.mubr.f32.vlgmr.msra.gmra.mxu0 %v4049_v5 }
 0x1a8   : > { %3621 = vmatpush3.msra.mxu0 %v931_v31  ;;  %v933_v33 = vand.u32 4294901760, %v932_v32  ;;  %3622 = vmatprep.mubr.msk.f32.mxu0 %vm3839_vm0, %v3838_v0  ;;  %v1820_v31 = vpop.permute.xlu1 %1819 }
 0x1a9   : > { %3630 = vmatprep.subr.mxu0 %v3838_v0  ;;  %v1804_v24 = vpop.permute.xlu0 %1803 }
 0x1aa   : > { %3606 = vmatpush3.msra.mxu1 %v933_v33  ;;  %v4131_v23 = vsel %vm720_vm5, %v1804_v24, %v1806_v22 }
 0x1ab   : > { %3608 = vmatmul.mubr.f32.vlgmr.msra.gmra.mxu1 %v4044_v59  ;;  %3615 = vmatprep.subr.mxu1 %v3838_v0  ;;  %v3789_v46 = vpop.eup %3788 }
 0x1ac   : > { %3623 = vmatmul.mubr.f32.vlgmr.msra.gmra.mxu0 %v4044_v59  ;;  %3616 = vmatpush3.msra.mxu1 %v853_v29  ;;  %v816_v62 = vmul.f32 %v3789_v46, %v4061_v26 }
 0x1ad   : > { %3631 = vmatpush3.msra.mxu0 %v1311_v51  ;;  %3617 = vmatprep.mubr.msk.f32.mxu1 %vm3839_vm0, %v3838_v0  ;;  %v1818_v32 = vpop.permute.xlu0 %1817 }
 0x1ae   : > { %3625 = vmatprep.subr.mxu1 %v3838_v0  ;;  %3632 = vmatprep.mubr.msk.f32.mxu0 %vm3839_vm0, %v3838_v0  ;;  %v817_v53 = vsub.f32 2.0, %v816_v62 }
 0x1af   : > { %3640 = vmatprep.subr.mxu0 %v3838_v0  ;;  %3618 = vmatmul.mubr.f32.vlgmr.msra.gmra.mxu1 %v4054_v16 }
 0x1b0   : > { %3626 = vmatpush3.msra.mxu1 %v853_v29  ;;  %3633 = vmatmul.mubr.f32.vlgmr.msra.gmra.mxu0 %v3956_v13  ;;  %v818_v17 = vmul.f32 %v3789_v46, %v817_v53  ;;  %v4143_v46 = vsel %vm667_vm8, %v1754_v44, %v1756_v43 }
 0x1b1   : > { %3641 = vmatpush3.msra.mxu0 %v1388_v42  ;;  %3627 = vmatprep.mubr.msk.f32.mxu1 %vm3839_vm0, %v3838_v0 }
 0x1b2   : > { %3635 = vmatprep.subr.mxu1 %v3838_v0  ;;  %3642 = vmatprep.mubr.msk.f32.mxu0 %vm3839_vm0, %v3838_v0 }
 0x1b3   : > { %3650 = vmatprep.subr.mxu0 %v3838_v0  ;;  %3628 = vmatmul.mubr.f32.vlgmr.msra.gmra.mxu1 %v4044_v59 }
 0x1b4   : > { %3636 = vmatpush3.msra.mxu1 %v1391_v35  ;;  %3643 = vmatmul.mubr.f32.vlgmr.msra.gmra.mxu0 %v3945_v7  ;;  %v4134_v35 = vsel %vm735_vm6, %v1818_v32, %v1820_v31 }
 0x1b5   : > { %3651 = vmatpush3.msra.mxu0 %v1389_v34  ;;  %3637 = vmatprep.mubr.msk.f32.mxu1 %vm3839_vm0, %v3838_v0  ;;  %v4128_v34 = vsel %vm705_vm4, %v1790_v14, %v1792_v10 }
 0x1b6   : > { %3645 = vmatprep.subr.mxu1 %v3838_v0  ;;  %3652 = vmatprep.mubr.msk.f32.mxu0 %vm3839_vm0, %v3838_v0 }
 0x1b7   : > { %3638 = vmatmul.mubr.f32.vlgmr.msra.gmra.mxu1 %v3941_v6  ;;  %3660 = vmatprep.subr.mxu0 %v3838_v0 }
 0x1b8   : > { %3646 = vmatpush3.msra.mxu1 %v1311_v51  ;;  %3647 = vmatprep.mubr.msk.f32.mxu1 %vm3839_vm0, %v3838_v0 }
 0x1b9   : > { %3655 = vmatprep.subr.mxu1 %v3838_v0  ;;  %3653 = vmatmul.mubr.f32.vlgmr.msra.gmra.mxu0 %v3941_v6 }
 0x1ba   : > { %3662 = vmatprep.mubr.msk.f32.mxu0 %vm3839_vm0, %v3838_v0 }
 0x1bb   : > { %3648 = vmatmul.mubr.f32.vlgmr.msra.gmra.mxu1 %v3949_v8 }
 0x1bc   : > { %3656 = vmatpush3.msra.mxu1 %v1311_v51  ;;  %3657 = vmatprep.mubr.msk.f32.mxu1 %vm3839_vm0, %v3838_v0 }
 0x1bd   : > { %3665 = vmatprep.subr.mxu1 %v3838_v0 }
 0x1bf   : > { %3658 = vmatmul.mubr.f32.vlgmr.msra.gmra.mxu1 %v3941_v6 }
 0x1c0   : > { %3667 = vmatprep.mubr.msk.f32.mxu1 %vm3839_vm0, %v3838_v0 }
 0x263   : > { %v894_v40 = vpop.f32.mrf.mxu0 }
 0x265   : > { %v3604_v41 = vpop.f32.mrf.mxu0 }
 0x266   : > { %v4137_v41 = vsel %vm638_vm3, %v1727_v37, %v1729_v36 }
 0x267   : > { %v1044_v45 = vpop.f32.mrf.mxu0 }
 0x269   : > { %v3614_v47 = vpop.f32.mrf.mxu0 }
 0x26a   : > { %v4146_v47 = vsel %vm682_vm9, %v1768_v61, %v1770_v57 }
 0x26b   : > { %v970_v48 = vpop.f32.mrf.mxu1 }
 0x26c   : > { %v971_v58 = vadd.f32 %v970_v48, %v894_v40  ;;  %v1192_v60 = vpop.f32.mrf.mxu0 }
 0x26d   : > { %v3609_v63 = vpop.f32.mrf.mxu1 }
 0x26e   : > { %v1045_v1 = vadd.f32 %v1044_v45, %v971_v58  ;;  %v3624_v2 = vpop.f32.mrf.mxu0  ;;  %v4140_v45 = vsel %vm652_vm7, %v1740_v39, %v1742_v38 }
 0x26f   : > { %v1118_v3 = vpop.f32.mrf.mxu1 }
 0x270   : > { %v1119_v4 = vadd.f32 %v1118_v3, %v1045_v1  ;;  %v1352_v54 = vpop.f32.mrf.mxu0 }
 0x271   : > { %v3619_v9 = vpop.f32.mrf.mxu1 }
 0x272   : > { %v1193_v11 = vadd.f32 %v1192_v60, %v1119_v4  ;;  %v3634_v15 = vpop.f32.mrf.mxu0 }
 0x273   : > { %v1264_v55 = vpop.f32.mrf.mxu1 }
 0x274   : > { %v1265_v56 = vadd.f32 %v1264_v55, %v1193_v11  ;;  %v1502_v18 = vpop.f32.mrf.mxu0 }
 0x275   : > { %v3629_v19 = vpop.f32.mrf.mxu1 }
 0x276   : > { %v1268_v20 = vmul.f32 %v1265_v56, %v818_v17  ;;  %v3644_v52 = vpop.f32.mrf.mxu0 }
 0x277   : > { %v1428_v21 = vpop.f32.mrf.mxu1 }
 0x278   : > { %1269 = vst [vmem:[%s4124_s7] sm:$0xff] %v1268_v20  ;;  %v1429_v12 = vadd.f32 %v1428_v21, %v1352_v54  ;;  %v1834_v21 = vpop.permute.xlu1 %1833 }
 0x279   : > { %v3639_v49 = vpop.f32.mrf.mxu1  ;;  %v1650_v25 = vpop.f32.mrf.mxu0 }
 0x27a   : > { %v1503_v26 = vadd.f32 %v1502_v18, %v1429_v12 }
 0x27b   : > { %v1576_v50 = vpop.f32.mrf.mxu1  ;;  %v3654_v29 = vpop.f32.mrf.mxu0 }
 0x27c   : > { %v1577_v51 = vadd.f32 %v1576_v50, %v1503_v26 }
 0x27d   : > { %v3649_v30 = vpop.f32.mrf.mxu1 }
 0x27e   : > { %v1651_v42 = vadd.f32 %v1650_v25, %v1577_v51  ;;  %v1832_v25 = vpop.permute.xlu0 %1831 }
 0x27f   : > { %v1722_v33 = vpop.f32.mrf.mxu1  ;;  %v4157_v31 = vsel %vm750_vm10, %v1832_v25, %v1834_v21 }
 0x280   : > { %v1723_v40 = vadd.f32 %v1722_v33, %v1651_v42 }
 0x281   : > { %v3659_v48 = vpop.f32.mrf.mxu1 }
 0x282   : > { %v1732_v58 = vmul.f32 %v4137_v41, %v1723_v40  ;;  %v1745_v60 = vmul.f32 %v4140_v45, %v1723_v40  ;;  %v1759_v62 = vmul.f32 %v4143_v46, %v1723_v40  ;;  %v1773_v63 = vmul.f32 %v4146_v47, %v1723_v40 }
 0x283   : > { %v1781_v36 = vmul.f32 %v1723_v40, %v4064_v27  ;;  %v1795_v37 = vmul.f32 %v4128_v34, %v1723_v40  ;;  %v1809_v38 = vmul.f32 %v4131_v23, %v1723_v40  ;;  %v1823_v39 = vmul.f32 %v4134_v35, %v1723_v40 }
 0x284   : > { %v1733_v43 = vrot.slane %v1732_v58, 4  ;;  %v1746_v44 = vrot.slane %v1745_v60, 4  ;;  %v1760_v57 = vrot.slane %v1759_v62, 4  ;;  %v1774_v61 = vrot.slane %v1773_v63, 4 }
 0x285   : > { %v1782_v1 = vrot.slane %v1781_v36, 4  ;;  %v1796_v2 = vrot.slane %v1795_v37, 4  ;;  %v1810_v3 = vrot.slane %v1809_v38, 4  ;;  %v1824_v4 = vrot.slane %v1823_v39, 4 }
 0x286   : > { %v1734_v53 = vadd.f32 %v1733_v43, %v1732_v58  ;;  %v1747_v54 = vadd.f32 %v1746_v44, %v1745_v60  ;;  %v1761_v9 = vadd.f32 %v1760_v57, %v1759_v62  ;;  %v1775_v10 = vadd.f32 %v1774_v61, %v1773_v63 }
 0x287   : > { %v1783_v11 = vadd.f32 %v1782_v1, %v1781_v36  ;;  %v1797_v14 = vadd.f32 %v1796_v2, %v1795_v37  ;;  %v1811_v15 = vadd.f32 %v1810_v3, %v1809_v38  ;;  %v1825_v52 = vadd.f32 %v1824_v4, %v1823_v39 }
 0x288   : > { %v1735_v55 = vrot.slane %v1734_v53, 2  ;;  %v1748_v17 = vrot.slane %v1747_v54, 2  ;;  %v1762_v56 = vrot.slane %v1761_v9, 2  ;;  %v1776_v18 = vrot.slane %v1775_v10, 2 }
 0x289   : > { %v1784_v19 = vrot.slane %v1783_v11, 2  ;;  %v1798_v20 = vrot.slane %v1797_v14, 2  ;;  %v1812_v26 = vrot.slane %v1811_v15, 2  ;;  %v1826_v42 = vrot.slane %v1825_v52, 2 }
 0x28a   : > { %v1736_v12 = vadd.f32 %v1735_v55, %v1734_v53  ;;  %v1749_v22 = vadd.f32 %v1748_v17, %v1747_v54  ;;  %v1763_v24 = vadd.f32 %v1762_v56, %v1761_v9  ;;  %v1777_v49 = vadd.f32 %v1776_v18, %v1775_v10 }
 0x28b   : > { %v1785_v30 = vadd.f32 %v1784_v19, %v1783_v11  ;;  %v1799_v58 = vadd.f32 %v1798_v20, %v1797_v14  ;;  %v1813_v60 = vadd.f32 %v1812_v26, %v1811_v15  ;;  %v1837_v37 = vmul.f32 %v4157_v31, %v1723_v40 }
 0x28c   : > { %v1737_v50 = vrot.slane %v1736_v12, 1  ;;  %v1750_v29 = vrot.slane %v1749_v22, 1  ;;  %v1764_v51 = vrot.slane %v1763_v24, 1  ;;  %v1778_v48 = vrot.slane %v1777_v49, 1 }
 0x28d   : > { %v1786_v36 = vrot.slane %v1785_v30, 1  ;;  %v1827_v38 = vadd.f32 %v1826_v42, %v1825_v52  ;;  %v1800_v44 = vrot.slane %v1799_v58, 1  ;;  %v1838_v57 = vrot.slane %v1837_v37, 4 }
 0x28e   : > { %v1738_v32 = vadd.f32 %v1737_v50, %v1736_v12  ;;  %v1751_v33 = vadd.f32 %v1750_v29, %v1749_v22  ;;  %v1765_v63 = vadd.f32 %v1764_v51, %v1763_v24  ;;  %v1779_v43 = vadd.f32 %v1778_v48, %v1777_v49 }
 0x28f   : > { %v1787_v1 = vadd.f32 %v1786_v36, %v1785_v30  ;;  %v1814_v2 = vrot.slane %v1813_v60, 1  ;;  %v1839_v3 = vadd.f32 %v1838_v57, %v1837_v37  ;;  %v1801_v53 = vadd.f32 %v1800_v44, %v1799_v58 }
 0x290   : > { %v1752_v62 = vmax.f32 %v1738_v32, %v1751_v33  ;;  %v1828_v54 = vrot.slane %v1827_v38, 1 }
 0x291   : > { %v1840_v9 = vrot.slane %v1839_v3, 2  ;;  %v1815_v11 = vadd.f32 %v1814_v2, %v1813_v60 }
 0x292   : > { %v1766_v39 = vmax.f32 %v1752_v62, %v1765_v63  ;;  %v1829_v55 = vadd.f32 %v1828_v54, %v1827_v38 }
 0x293   : > { %v1841_v14 = vadd.f32 %v1840_v9, %v1839_v3 }
 0x294   : > { %v1780_v61 = vmax.f32 %v1766_v39, %v1779_v43 }
 0x295   : > { %v1842_v17 = vrot.slane %v1841_v14, 1 }
 0x296   : > { %v1788_v4 = vmax.f32 %v1780_v61, %v1787_v1 }
 0x297   : > { %v1843_v56 = vadd.f32 %v1842_v17, %v1841_v14 }
 0x298   : > { %v1802_v10 = vmax.f32 %v1788_v4, %v1801_v53 }
 0x29a   : > { %v1816_v15 = vmax.f32 %v1802_v10, %v1815_v11 }
 0x29c   : > { %v1830_v40 = vmax.f32 %v1816_v15, %v1829_v55 }
 0x29e   : > { %v1844_v18 = vmax.f32 %v1830_v40, %v1843_v56  ;;  %v2358_v40 = vpop.permute.xlu1 %2357 }
 0x2a0   : > { %v1845_v19 = vsub.f32 %v1738_v32, %v1844_v18  ;;  %v1851_v20 = vsub.f32 %v1751_v33, %v1844_v18  ;;  %v1857_v52 = vsub.f32 %v1765_v63, %v1844_v18  ;;  %v1863_v21 = vsub.f32 %v1779_v43, %v1844_v18 }
 0x2a1   : > { %v1869_v12 = vsub.f32 %v1787_v1, %v1844_v18  ;;  %v1875_v26 = vsub.f32 %v1801_v53, %v1844_v18  ;;  %v1881_v29 = vsub.f32 %v1815_v11, %v1844_v18  ;;  %v1887_v30 = vsub.f32 %v1829_v55, %v1844_v18 }
 0x2a2   : > { %v1846_v22 = vmul.f32 1.442695, %v1845_v19  ;;  %v1852_v24 = vmul.f32 1.442695, %v1851_v20  ;;  %v1858_v49 = vmul.f32 1.442695, %v1857_v52  ;;  %v1893_v32 = vsub.f32 %v1843_v56, %v1844_v18  ;;  %v2356_v56 = vpop.permute.xlu0 %2355 }
 0x2a3   : > { %v1864_v25 = vmul.f32 1.442695, %v1863_v21  ;;  %v1870_v50 = vmul.f32 1.442695, %v1869_v12  ;;  %v1876_v51 = vmul.f32 1.442695, %v1875_v26 }
 0x2a4   : > { %3790 = vpow2.f32 %v1846_v22  ;;  %v1882_v42 = vmul.f32 1.442695, %v1881_v29  ;;  %v1888_v33 = vmul.f32 1.442695, %v1887_v30  ;;  %v1894_v48 = vmul.f32 1.442695, %v1893_v32 }
 0x2a5   : > { %3792 = vpow2.f32 %v1852_v24 }
 0x2a6   : > { %3794 = vpow2.f32 %v1858_v49 }
 0x2a7   : > { %3796 = vpow2.f32 %v1864_v25 }
 0x2a8   : > { %3798 = vpow2.f32 %v1870_v50 }
 0x2a9   : > { %3800 = vpow2.f32 %v1876_v51 }
 0x2aa   : > { %3802 = vpow2.f32 %v1882_v42 }
 0x2ab   : > { %3804 = vpow2.f32 %v1888_v33 }
 0x2ac   : > { %3806 = vpow2.f32 %v1894_v48 }
 0x2b1   : > { %v3791_v58 = vpop.eup %3790 }
 0x2b2   : > { %v3793_v60 = vpop.eup %3792  ;;  %v1849_v62 = vmul.f32 %v3791_v58, %v4137_v41 }
 0x2b3   : > { %v3795_v63 = vpop.eup %3794  ;;  %v1855_v36 = vmul.f32 %v3793_v60, %v4140_v45  ;;  %v1854_v37 = vadd.f32 %v3793_v60, %v3791_v58 }
 0x2b4   : > { %v3797_v38 = vpop.eup %3796  ;;  %v1861_v43 = vmul.f32 %v3795_v63, %v4143_v46 }
 0x2b5   : > { %v1856_v39 = vadd.f32 %v1855_v36, %v1849_v62  ;;  %v1860_v44 = vadd.f32 %v3795_v63, %v1854_v37  ;;  %v3799_v57 = vpop.eup %3798  ;;  %v1867_v1 = vmul.f32 %v3797_v38, %v4146_v47 }
 0x2b6   : > { %v3801_v3 = vpop.eup %3800  ;;  %v1873_v53 = vmul.f32 %v3799_v57, %v4064_v27 }
 0x2b7   : > { %v1862_v61 = vadd.f32 %v1861_v43, %v1856_v39  ;;  %v1866_v2 = vadd.f32 %v3797_v38, %v1860_v44  ;;  %v3803_v41 = vpop.eup %3802  ;;  %v1879_v45 = vmul.f32 %v3801_v3, %v4128_v34  ;;  %v4172_v34 = vsel %vm181_vm2, %v2356_v56, %v2358_v40 }
 0x2b8   : > { %v3805_v11 = vpop.eup %3804  ;;  %v1885_v46 = vmul.f32 %v3803_v41, %v4131_v23  ;;  %v2392_v23 = vand.u32 4294901760, %v4172_v34 }
 0x2b9   : > { %v1868_v4 = vadd.f32 %v1867_v1, %v1862_v61  ;;  %v1872_v54 = vadd.f32 %v3799_v57, %v1866_v2  ;;  %v3807_v55 = vpop.eup %3806  ;;  %v1891_v47 = vmul.f32 %v3805_v11, %v4134_v35 }
 0x2ba   : > { %v1897_v27 = vmul.f32 %v3807_v55, %v4157_v31  ;;  %v2469_v35 = vsub.f32 %v4172_v34, %v2392_v23 }
 0x2bb   : > { %v1874_v9 = vadd.f32 %v1873_v53, %v1868_v4  ;;  %v1878_v10 = vadd.f32 %v3801_v3, %v1872_v54 }
 0x2bc   : > { %v2470_v49 = vand.u32 4294901760, %v2469_v35 }
 0x2bd   : > { %v1880_v14 = vadd.f32 %v1879_v45, %v1874_v9  ;;  %v1884_v15 = vadd.f32 %v3803_v41, %v1878_v10 }
 0x2be   : > { %v2471_v25 = vsub.f32 %v2469_v35, %v2470_v49 }
 0x2bf   : > { %v1886_v17 = vadd.f32 %v1885_v46, %v1880_v14  ;;  %v1890_v18 = vadd.f32 %v3805_v11, %v1884_v15 }
 0x2c0   : > { %v2472_v26 = vand.u32 4294901760, %v2471_v25 }
 0x2c1   : > { %v1892_v19 = vadd.f32 %v1891_v47, %v1886_v17  ;;  %v4169_v20 = vadd.f32 %v3807_v55, %v1890_v18 }
 0x2c3   : > { %v1898_v52 = vadd.f32 %v1897_v27, %v1892_v19  ;;  %3808 = vrcp.f32 %v4169_v20 }
 0x2c5   : > { %v1934_v21 = vand.u32 4294901760, %v1898_v52 }
 0x2c7   : > { %v2011_v12 = vsub.f32 %v1898_v52, %v1934_v21  ;;  %3661 = vmatpush3.msra.mxu0 %v1934_v21 }
 0x2c8   : > { %3663 = vmatmul.mubr.f32.vlgmr.msra.gmra.mxu0 %v4066_v28  ;;  %3670 = vmatprep.subr.mxu0 %v3838_v0 }
 0x2c9   : > { %3671 = vmatpush3.msra.mxu0 %v2011_v12  ;;  %3672 = vmatprep.mubr.msk.f32.mxu0 %vm3839_vm0, %v3838_v0  ;;  %v2012_v31 = vand.u32 4294901760, %v2011_v12 }
 0x2ca   : > { %3680 = vmatprep.subr.mxu0 %v3838_v0 }
 0x2cb   : > { %v2013_v22 = vsub.f32 %v2011_v12, %v2012_v31 }
 0x2cc   : > { %3673 = vmatmul.mubr.f32.vlgmr.msra.gmra.mxu0 %v4049_v5 }
 0x2cd   : > { %3681 = vmatpush3.msra.mxu0 %v2012_v31  ;;  %v2014_v24 = vand.u32 4294901760, %v2013_v22  ;;  %3682 = vmatprep.mubr.msk.f32.mxu0 %vm3839_vm0, %v3838_v0 }
 0x2ce   : > { %3690 = vmatprep.subr.mxu0 %v3838_v0 }
 0x2cf   : > { %3666 = vmatpush3.msra.mxu1 %v2014_v24 }
 0x2d0   : > { %3668 = vmatmul.mubr.f32.vlgmr.msra.gmra.mxu1 %v4044_v59  ;;  %3675 = vmatprep.subr.mxu1 %v3838_v0  ;;  %v3809_v33 = vpop.eup %3808 }
 0x2d1   : > { %3683 = vmatmul.mubr.f32.vlgmr.msra.gmra.mxu0 %v4044_v59  ;;  %3676 = vmatpush3.msra.mxu1 %v1934_v21  ;;  %v1900_v36 = vmul.f32 %v3809_v33, %v4169_v20 }
 0x2d2   : > { %3691 = vmatpush3.msra.mxu0 %v2392_v23  ;;  %3677 = vmatprep.mubr.msk.f32.mxu1 %vm3839_vm0, %v3838_v0 }
 0x2d3   : > { %3685 = vmatprep.subr.mxu1 %v3838_v0  ;;  %3692 = vmatprep.mubr.msk.f32.mxu0 %vm3839_vm0, %v3838_v0  ;;  %v1901_v57 = vsub.f32 2.0, %v1900_v36 }
 0x2d4   : > { %3700 = vmatprep.subr.mxu0 %v3838_v0  ;;  %3678 = vmatmul.mubr.f32.vlgmr.msra.gmra.mxu1 %v4054_v16 }
 0x2d5   : > { %3686 = vmatpush3.msra.mxu1 %v1934_v21  ;;  %3693 = vmatmul.mubr.f32.vlgmr.msra.gmra.mxu0 %v3956_v13  ;;  %v2808_v13 = vpop.permute.xlu0 %2807  ;;  %v1902_v41 = vmul.f32 %v3809_v33, %v1901_v57 }
 0x2d6   : > { %3701 = vmatpush3.msra.mxu0 %v2469_v35  ;;  %3687 = vmatprep.mubr.msk.f32.mxu1 %vm3839_vm0, %v3838_v0 }
 0x2d7   : > { %3695 = vmatprep.subr.mxu1 %v3838_v0  ;;  %3702 = vmatprep.mubr.msk.f32.mxu0 %vm3839_vm0, %v3838_v0 }
 0x2d8   : > { %3710 = vmatprep.subr.mxu0 %v3838_v0  ;;  %3688 = vmatmul.mubr.f32.vlgmr.msra.gmra.mxu1 %v4044_v59 }
 0x2d9   : > { %3696 = vmatpush3.msra.mxu1 %v2472_v26  ;;  %3703 = vmatmul.mubr.f32.vlgmr.msra.gmra.mxu0 %v3945_v7  ;;  %v2810_v7 = vpop.permute.xlu1 %2809  ;;  %v2821_v29 = vpop.permute.xlu0 %2820 }
 0x2da   : > { %3711 = vmatpush3.msra.mxu0 %v2470_v49  ;;  %3697 = vmatprep.mubr.msk.f32.mxu1 %vm3839_vm0, %v3838_v0  ;;  %v4237_v49 = vsel %vm638_vm3, %v2808_v13, %v2810_v7 }
 0x2db   : > { %3705 = vmatprep.subr.mxu1 %v3838_v0  ;;  %3712 = vmatprep.mubr.msk.f32.mxu0 %vm3839_vm0, %v3838_v0 }
 0x2dc   : > { %3698 = vmatmul.mubr.f32.vlgmr.msra.gmra.mxu1 %v3941_v6  ;;  %3720 = vmatprep.subr.mxu0 %v3838_v0 }
 0x2dd   : > { %3706 = vmatpush3.msra.mxu1 %v2392_v23  ;;  %3707 = vmatprep.mubr.msk.f32.mxu1 %vm3839_vm0, %v3838_v0  ;;  %v2823_v50 = vpop.permute.xlu1 %2822  ;;  %v2835_v42 = vpop.permute.xlu0 %2834 }
 0x2de   : > { %3715 = vmatprep.subr.mxu1 %v3838_v0  ;;  %3713 = vmatmul.mubr.f32.vlgmr.msra.gmra.mxu0 %v3941_v6  ;;  %v4240_v25 = vsel %vm652_vm7, %v2821_v29, %v2823_v50 }
 0x2df   : > { %3722 = vmatprep.mubr.msk.f32.mxu0 %vm3839_vm0, %v3838_v0 }
 0x2e0   : > { %3708 = vmatmul.mubr.f32.vlgmr.msra.gmra.mxu1 %v3949_v8 }
 0x2e1   : > { %3716 = vmatpush3.msra.mxu1 %v2392_v23  ;;  %3717 = vmatprep.mubr.msk.f32.mxu1 %vm3839_vm0, %v3838_v0  ;;  %v2837_v8 = vpop.permute.xlu1 %2836  ;;  %v2849_v63 = vpop.permute.xlu0 %2848 }
 0x2e2   : > { %3725 = vmatprep.subr.mxu1 %v3838_v0  ;;  %v4243_v26 = vsel %vm667_vm8, %v2835_v42, %v2837_v8 }
 0x2e4   : > { %3718 = vmatmul.mubr.f32.vlgmr.msra.gmra.mxu1 %v3941_v6 }
 0x2e5   : > { %3727 = vmatprep.mubr.msk.f32.mxu1 %vm3839_vm0, %v3838_v0  ;;  %v2851_v60 = vpop.permute.xlu1 %2850  ;;  %v2871_v4 = vpop.permute.xlu0 %2870 }
 0x2e9   : > { %v2873_v2 = vpop.permute.xlu1 %2872  ;;  %v2885_v17 = vpop.permute.xlu0 %2884 }
 0x2ea   : > { %v4228_v35 = vsel %vm705_vm4, %v2871_v4, %v2873_v2 }
 0x2ed   : > { %v2887_v55 = vpop.permute.xlu1 %2886  ;;  %v2899_v23 = vpop.permute.xlu0 %2898 }
 0x2ee   : > { %v4231_v31 = vsel %vm720_vm5, %v2885_v17, %v2887_v55 }
 0x2f1   : > { %v2901_v21 = vpop.permute.xlu1 %2900 }
 0x2f2   : > { %v4234_v22 = vsel %vm735_vm6, %v2899_v23, %v2901_v21 }
 0x388   : > { %v1975_v51 = vpop.f32.mrf.mxu0 }
 0x38a   : > { %v3664_v30 = vpop.f32.mrf.mxu0 }
 0x38c   : > { %v2125_v32 = vpop.f32.mrf.mxu0 }
 0x38e   : > { %v3674_v48 = vpop.f32.mrf.mxu0 }
 0x390   : > { %v2051_v58 = vpop.f32.mrf.mxu1 }
 0x391   : > { %v2052_v62 = vadd.f32 %v2051_v58, %v1975_v51  ;;  %v2273_v6 = vpop.f32.mrf.mxu0  ;;  %v4246_v51 = vsel %vm682_vm9, %v2849_v63, %v2851_v60 }
 0x392   : > { %v3669_v37 = vpop.f32.mrf.mxu1 }
 0x393   : > { %v2126_v38 = vadd.f32 %v2125_v32, %v2052_v62  ;;  %v3684_v39 = vpop.f32.mrf.mxu0 }
 0x394   : > { %v2199_v43 = vpop.f32.mrf.mxu1 }
 0x395   : > { %v2200_v44 = vadd.f32 %v2199_v43, %v2126_v38  ;;  %v2433_v61 = vpop.f32.mrf.mxu0 }
 0x396   : > { %v3679_v1 = vpop.f32.mrf.mxu1 }
 0x397   : > { %v2274_v3 = vadd.f32 %v2273_v6, %v2200_v44  ;;  %v3694_v53 = vpop.f32.mrf.mxu0 }
 0x398   : > { %v2345_v54 = vpop.f32.mrf.mxu1 }
 0x399   : > { %v2346_v9 = vadd.f32 %v2345_v54, %v2274_v3  ;;  %v2583_v45 = vpop.f32.mrf.mxu0 }
 0x39a   : > { %v3689_v10 = vpop.f32.mrf.mxu1 }
 0x39b   : > { %v2349_v11 = vmul.f32 %v2346_v9, %v1902_v41  ;;  %v3704_v14 = vpop.f32.mrf.mxu0 }
 0x39c   : > { %v2509_v46 = vpop.f32.mrf.mxu1 }
 0x39d   : > { %2350 = vst [vmem:[%s4124_s7 + $0x8] sm:$0xff] %v2349_v11  ;;  %v2510_v15 = vadd.f32 %v2509_v46, %v2433_v61 }
 0x39e   : > { %v3699_v47 = vpop.f32.mrf.mxu1  ;;  %v2731_v40 = vpop.f32.mrf.mxu0 }
 0x39f   : > { %v2584_v56 = vadd.f32 %v2583_v45, %v2510_v15  ;;  %v2915_v45 = vpop.permute.xlu1 %2914  ;;  %v2913_v15 = vpop.permute.xlu0 %2912 }
 0x3a0   : > { %v2657_v18 = vpop.f32.mrf.mxu1  ;;  %v3714_v19 = vpop.f32.mrf.mxu0 }
 0x3a1   : > { %v2658_v27 = vadd.f32 %v2657_v18, %v2584_v56  ;;  %v4257_v19 = vsel %vm750_vm10, %v2913_v15, %v2915_v45 }
 0x3a2   : > { %v3709_v20 = vpop.f32.mrf.mxu1 }
 0x3a3   : > { %v2732_v52 = vadd.f32 %v2731_v40, %v2658_v27 }
 0x3a4   : > { %v2803_v12 = vpop.f32.mrf.mxu1 }
 0x3a5   : > { %v2804_v24 = vadd.f32 %v2803_v12, %v2732_v52 }
 0x3a6   : > { %v3719_v30 = vpop.f32.mrf.mxu1 }
 0x3a7   : > { %v2813_v32 = vmul.f32 %v4237_v49, %v2804_v24  ;;  %v2826_v33 = vmul.f32 %v4240_v25, %v2804_v24  ;;  %v2840_v48 = vmul.f32 %v4243_v26, %v2804_v24  ;;  %v2854_v58 = vmul.f32 %v4246_v51, %v2804_v24 }
 0x3a8   : > { %v2862_v7 = vmul.f32 %v2804_v24, %v4172_v34  ;;  %v2876_v13 = vmul.f32 %v4228_v35, %v2804_v24  ;;  %v2890_v50 = vmul.f32 %v4231_v31, %v2804_v24  ;;  %v2904_v29 = vmul.f32 %v4234_v22, %v2804_v24 }
 0x3a9   : > { %v2814_v8 = vrot.slane %v2813_v32, 4  ;;  %v2827_v42 = vrot.slane %v2826_v33, 4  ;;  %v2841_v60 = vrot.slane %v2840_v48, 4  ;;  %v2855_v62 = vrot.slane %v2854_v58, 4 }
 0x3aa   : > { %v2863_v6 = vrot.slane %v2862_v7, 4  ;;  %v2877_v63 = vrot.slane %v2876_v13, 4  ;;  %v2891_v36 = vrot.slane %v2890_v50, 4  ;;  %v2905_v37 = vrot.slane %v2904_v29, 4 }
 0x3ab   : > { %v2815_v38 = vadd.f32 %v2814_v8, %v2813_v32  ;;  %v2828_v39 = vadd.f32 %v2827_v42, %v2826_v33  ;;  %v2842_v43 = vadd.f32 %v2841_v60, %v2840_v48  ;;  %v2856_v44 = vadd.f32 %v2855_v62, %v2854_v58 }
 0x3ac   : > { %v2864_v57 = vadd.f32 %v2863_v6, %v2862_v7  ;;  %v2878_v61 = vadd.f32 %v2877_v63, %v2876_v13  ;;  %v2892_v1 = vadd.f32 %v2891_v36, %v2890_v50  ;;  %v2906_v9 = vadd.f32 %v2905_v37, %v2904_v29 }
 0x3ad   : > { %v2816_v2 = vrot.slane %v2815_v38, 2  ;;  %v2829_v3 = vrot.slane %v2828_v39, 2  ;;  %v2843_v4 = vrot.slane %v2842_v43, 2  ;;  %v2857_v53 = vrot.slane %v2856_v44, 2 }
 0x3ae   : > { %v2865_v54 = vrot.slane %v2864_v57, 2  ;;  %v2879_v41 = vrot.slane %v2878_v61, 2  ;;  %v2893_v55 = vrot.slane %v2892_v1, 2  ;;  %v2907_v18 = vrot.slane %v2906_v9, 2 }
 0x3af   : > { %v2817_v10 = vadd.f32 %v2816_v2, %v2815_v38  ;;  %v2830_v11 = vadd.f32 %v2829_v3, %v2828_v39  ;;  %v2844_v14 = vadd.f32 %v2843_v4, %v2842_v43  ;;  %v2858_v46 = vadd.f32 %v2857_v53, %v2856_v44 }
 0x3b0   : > { %v2866_v56 = vadd.f32 %v2865_v54, %v2864_v57  ;;  %v2880_v21 = vadd.f32 %v2879_v41, %v2878_v61  ;;  %v2894_v23 = vadd.f32 %v2893_v55, %v2892_v1  ;;  %v2918_v33 = vmul.f32 %v4257_v19, %v2804_v24 }
 0x3b1   : > { %v2818_v17 = vrot.slane %v2817_v10, 1  ;;  %v2831_v47 = vrot.slane %v2830_v11, 1  ;;  %v2845_v40 = vrot.slane %v2844_v14, 1  ;;  %v2859_v52 = vrot.slane %v2858_v46, 1 }
 0x3b2   : > { %v2867_v32 = vrot.slane %v2866_v56, 1  ;;  %v2908_v48 = vadd.f32 %v2907_v18, %v2906_v9  ;;  %v2881_v13 = vrot.slane %v2880_v21, 1  ;;  %v2919_v50 = vrot.slane %v2918_v33, 4 }
 0x3b3   : > { %v2819_v27 = vadd.f32 %v2818_v17, %v2817_v10  ;;  %v2832_v20 = vadd.f32 %v2831_v47, %v2830_v11  ;;  %v2846_v30 = vadd.f32 %v2845_v40, %v2844_v14  ;;  %v2860_v7 = vadd.f32 %v2859_v52, %v2858_v46 }
 0x3b4   : > { %v2868_v8 = vadd.f32 %v2867_v32, %v2866_v56  ;;  %v2895_v42 = vrot.slane %v2894_v23, 1  ;;  %v2920_v60 = vadd.f32 %v2919_v50, %v2918_v33  ;;  %v2882_v6 = vadd.f32 %v2881_v13, %v2880_v21 }
 0x3b5   : > { %v2833_v12 = vmax.f32 %v2819_v27, %v2832_v20  ;;  %v2909_v63 = vrot.slane %v2908_v48, 1 }
 0x3b6   : > { %v2921_v36 = vrot.slane %v2920_v60, 2  ;;  %v2896_v38 = vadd.f32 %v2895_v42, %v2894_v23 }
 0x3b7   : > { %v2847_v58 = vmax.f32 %v2833_v12, %v2846_v30  ;;  %v2910_v44 = vadd.f32 %v2909_v63, %v2908_v48 }
 0x3b8   : > { %v2922_v39 = vadd.f32 %v2921_v36, %v2920_v60 }
 0x3b9   : > { %v2861_v29 = vmax.f32 %v2847_v58, %v2860_v7 }
 0x3ba   : > { %v2923_v57 = vrot.slane %v2922_v39, 1 }
 0x3bb   : > { %v2869_v62 = vmax.f32 %v2861_v29, %v2868_v8 }
 0x3bc   : > { %v2924_v61 = vadd.f32 %v2923_v57, %v2922_v39 }
 0x3bd   : > { %v2883_v37 = vmax.f32 %v2869_v62, %v2882_v6 }
 0x3bf   : > { %v2897_v43 = vmax.f32 %v2883_v37, %v2896_v38 }
 0x3c1   : > { %v2911_v24 = vmax.f32 %v2897_v43, %v2910_v44 }
 0x3c3   : > { %v2925_v1 = vmax.f32 %v2911_v24, %v2924_v61 }
 0x3c5   : > { %v2926_v2 = vsub.f32 %v2819_v27, %v2925_v1  ;;  %v2932_v3 = vsub.f32 %v2832_v20, %v2925_v1  ;;  %v2938_v4 = vsub.f32 %v2846_v30, %v2925_v1  ;;  %v2944_v53 = vsub.f32 %v2860_v7, %v2925_v1 }
 0x3c6   : > { %v2950_v54 = vsub.f32 %v2868_v8, %v2925_v1  ;;  %v2956_v11 = vsub.f32 %v2882_v6, %v2925_v1  ;;  %v2962_v46 = vsub.f32 %v2896_v38, %v2925_v1  ;;  %v2968_v55 = vsub.f32 %v2910_v44, %v2925_v1 }
 0x3c7   : > { %v2927_v41 = vmul.f32 1.442695, %v2926_v2  ;;  %v2933_v9 = vmul.f32 1.442695, %v2932_v3  ;;  %v2939_v45 = vmul.f32 1.442695, %v2938_v4  ;;  %v2974_v47 = vsub.f32 %v2924_v61, %v2925_v1 }
 0x3c8   : > { %v2945_v10 = vmul.f32 1.442695, %v2944_v53  ;;  %v2951_v14 = vmul.f32 1.442695, %v2950_v54  ;;  %v2957_v15 = vmul.f32 1.442695, %v2956_v11 }
 0x3c9   : > { %3810 = vpow2.f32 %v2927_v41  ;;  %v2963_v17 = vmul.f32 1.442695, %v2962_v46  ;;  %v2969_v40 = vmul.f32 1.442695, %v2968_v55  ;;  %v2975_v56 = vmul.f32 1.442695, %v2974_v47 }
 0x3ca   : > { %3812 = vpow2.f32 %v2933_v9 }
 0x3cb   : > { %3814 = vpow2.f32 %v2939_v45 }
 0x3cc   : > { %3816 = vpow2.f32 %v2945_v10 }
 0x3cd   : > { %3818 = vpow2.f32 %v2951_v14 }
 0x3ce   : > { %3820 = vpow2.f32 %v2957_v15 }
 0x3cf   : > { %3822 = vpow2.f32 %v2963_v17 }
 0x3d0   : > { %3824 = vpow2.f32 %v2969_v40 }
 0x3d1   : > { %3826 = vpow2.f32 %v2975_v56 }
 0x3d6   : > { %v3811_v18 = vpop.eup %3810 }
 0x3d7   : > { %v3813_v27 = vpop.eup %3812  ;;  %v2930_v20 = vmul.f32 %v3811_v18, %v4237_v49 }
 0x3d8   : > { %v3815_v52 = vpop.eup %3814  ;;  %v2936_v21 = vmul.f32 %v3813_v27, %v4240_v25  ;;  %v2935_v23 = vadd.f32 %v3813_v27, %v3811_v18 }
 0x3d9   : > { %v3817_v12 = vpop.eup %3816  ;;  %v2942_v32 = vmul.f32 %v3815_v52, %v4243_v26 }
 0x3da   : > { %v2937_v30 = vadd.f32 %v2936_v21, %v2930_v20  ;;  %v2941_v33 = vadd.f32 %v3815_v52, %v2935_v23  ;;  %v3819_v48 = vpop.eup %3818  ;;  %v2948_v7 = vmul.f32 %v3817_v12, %v4246_v51 }
 0x3db   : > { %v3821_v50 = vpop.eup %3820  ;;  %v2954_v8 = vmul.f32 %v3819_v48, %v4172_v34 }
 0x3dc   : > { %v2943_v58 = vadd.f32 %v2942_v32, %v2937_v30  ;;  %v2947_v13 = vadd.f32 %v3817_v12, %v2941_v33  ;;  %v3823_v49 = vpop.eup %3822  ;;  %v2960_v25 = vmul.f32 %v3821_v50, %v4228_v35 }
 0x3dd   : > { %v3825_v6 = vpop.eup %3824  ;;  %v2966_v26 = vmul.f32 %v3823_v49, %v4231_v31 }
 0x3de   : > { %v2949_v29 = vadd.f32 %v2948_v7, %v2943_v58  ;;  %v2953_v42 = vadd.f32 %v3819_v48, %v2947_v13  ;;  %v3827_v37 = vpop.eup %3826  ;;  %v2972_v51 = vmul.f32 %v3825_v6, %v4234_v22 }
 0x3df   : > { %v2978_v44 = vmul.f32 %v3827_v37, %v4257_v19 }
 0x3e0   : > { %v2955_v60 = vadd.f32 %v2954_v8, %v2949_v29  ;;  %v2959_v62 = vadd.f32 %v3821_v50, %v2953_v42 }
 0x3e2   : > { %v2961_v63 = vadd.f32 %v2960_v25, %v2955_v60  ;;  %v2965_v36 = vadd.f32 %v3823_v49, %v2959_v62 }
 0x3e4   : > { %v2967_v38 = vadd.f32 %v2966_v26, %v2961_v63  ;;  %v2971_v39 = vadd.f32 %v3825_v6, %v2965_v36 }
 0x3e6   : > { %v2973_v43 = vadd.f32 %v2972_v51, %v2967_v38  ;;  %v2977_v34 = vadd.f32 %v3827_v37, %v2971_v39 }
 0x3e8   : > { %v2979_v57 = vadd.f32 %v2978_v44, %v2973_v43  ;;  %3828 = vrcp.f32 %v2977_v34 }
 0x3ea   : > { %v3015_v24 = vand.u32 4294901760, %v2979_v57 }
 0x3ec   : > { %v3092_v61 = vsub.f32 %v2979_v57, %v3015_v24  ;;  %3721 = vmatpush3.msra.mxu0 %v3015_v24 }
 0x3ed   : > { %3723 = vmatmul.mubr.f32.vlgmr.msra.gmra.mxu0 %v4066_v28  ;;  %3730 = vmatprep.subr.mxu0 %v3838_v0 }
 0x3ee   : > { %3731 = vmatpush3.msra.mxu0 %v3092_v61  ;;  %3732 = vmatprep.mubr.msk.f32.mxu0 %vm3839_vm0, %v3838_v0  ;;  %v3093_v35 = vand.u32 4294901760, %v3092_v61 }
 0x3ef   : > { %3740 = vmatprep.subr.mxu0 %v3838_v0 }
 0x3f0   : > { %v3094_v31 = vsub.f32 %v3092_v61, %v3093_v35 }
 0x3f1   : > { %3733 = vmatmul.mubr.f32.vlgmr.msra.gmra.mxu0 %v4049_v5 }
 0x3f2   : > { %3741 = vmatpush3.msra.mxu0 %v3093_v35  ;;  %v3095_v22 = vand.u32 4294901760, %v3094_v31  ;;  %3742 = vmatprep.mubr.msk.f32.mxu0 %vm3839_vm0, %v3838_v0 }
 0x3f4   : > { %3726 = vmatpush3.msra.mxu1 %v3095_v22 }
 0x3f5   : > { %3728 = vmatmul.mubr.f32.vlgmr.msra.gmra.mxu1 %v4044_v59  ;;  %3735 = vmatprep.subr.mxu1 %v3838_v0  ;;  %v3829_v1 = vpop.eup %3828 }
 0x3f6   : > { %3736 = vmatpush3.msra.mxu1 %v3015_v24  ;;  %3737 = vmatprep.mubr.msk.f32.mxu1 %vm3839_vm0, %v3838_v0  ;;  %v2981_v53 = vmul.f32 %v3829_v1, %v2977_v34 }
 0x3f7   : > { %3745 = vmatprep.subr.mxu1 %v3838_v0  ;;  %3743 = vmatmul.mubr.f32.vlgmr.msra.gmra.mxu0 %v4044_v59 }
 0x3f8   : > { %v2982_v11 = vsub.f32 2.0, %v2981_v53 }
 0x3f9   : > { %3738 = vmatmul.mubr.f32.vlgmr.msra.gmra.mxu1 %v4054_v16 }
 0x3fa   : > { %3746 = vmatpush3.msra.mxu1 %v3015_v24  ;;  %3747 = vmatprep.mubr.msk.f32.mxu1 %vm3839_vm0, %v3838_v0  ;;  %v2983_v46 = vmul.f32 %v3829_v1, %v2982_v11 }
 0x3fd   : > { %3748 = vmatmul.mubr.f32.vlgmr.msra.gmra.mxu1 %v4044_v59 }
 0x4ad   : > { %v3056_v5 = vpop.f32.mrf.mxu0 }
 0x4af   : > { %v3724_v28 = vpop.f32.mrf.mxu0 }
 0x4b1   : > { %v3206_v19 = vpop.f32.mrf.mxu0 }
 0x4b3   : > { %v3734_v2 = vpop.f32.mrf.mxu0 }
 0x4b5   : > { %v3132_v3 = vpop.f32.mrf.mxu1 }
 0x4b6   : > { %v3133_v4 = vadd.f32 %v3132_v3, %v3056_v5 }
 0x4b7   : > { %v3729_v54 = vpop.f32.mrf.mxu1  ;;  %v3354_v41 = vpop.f32.mrf.mxu0 }
 0x4b8   : > { %v3207_v9 = vadd.f32 %v3206_v19, %v3133_v4 }
 0x4b9   : > { %v3280_v16 = vpop.f32.mrf.mxu1  ;;  %v3744_v45 = vpop.f32.mrf.mxu0 }
 0x4ba   : > { %v3281_v10 = vadd.f32 %v3280_v16, %v3207_v9 }
 0x4bb   : > { %v3739_v0 = vpop.f32.mrf.mxu1 }
 0x4bc   : > { %v3355_v14 = vadd.f32 %v3354_v41, %v3281_v10 }
 0x4bd   : > { %v3426_v59 = vpop.f32.mrf.mxu1 }
 0x4be   : > { %v3427_v15 = vadd.f32 %v3426_v59, %v3355_v14 }
 0x4bf   : > { %v3749_v55 = vpop.f32.mrf.mxu1 }
 0x4c0   : > { %v3430_v17 = vmul.f32 %v3427_v15, %v2983_v46 }
 0x4c2   : > { %3431 = vst [vmem:[%s4124_s7 + $0x10] sm:$0xff] %v3430_v17 }
 0x4c3 PF: > { %s13_s12 = sadd.s32 1, %s3836_s12  }
 0x4c4   : > { %p10_p4 = scmp.ge.s32.totalorder %s13_s12, 4  }
 0x4c6   :  { %12 = sbr.rel (!%p10_p4) target bundleno = 1 (0x1), region = 62 }

</bundles_post_ra>
